<compile_context>
chip_gen: v5e
topology: v5e:2x2
jax: 0.10.0
libtpu: 0.0.40
codegen_flags: <defaults>
</compile_context>

<pallas_src>
import functools

import jax
import jax.numpy as jnp
from jax.experimental import pallas as pl
from jax.experimental.pallas import tpu as pltpu

LEAKY_SLOPE = 0.01   # PyTorch nn.LeakyReLU default
LN_EPS = 1e-5        # PyTorch nn.LayerNorm default
LANE = 128
NEG_INF = -1e30      # padded-logit bias (not -inf, to avoid inf-inf NaNs)
ACT_DTYPE = jnp.bfloat16   # carried activation dtype between layers (= MXU operand dtype)


def _round_up(x, m):
    return ((x + m - 1) // m) * m


def _leaky_relu(x):
    # valid for 0 < slope < 1: mul + max (2 VALU ops) instead of cmp + select + mul
    return jnp.maximum(x, LEAKY_SLOPE * x)


def _linear_f32(h, w_ref, b_ref):
    # bf16 MXU operands, f32 accumulation; bias add in f32
    return jnp.dot(h.astype(w_ref.dtype), w_ref[...],
                   preferred_element_type=jnp.float32) + b_ref[...]


def _layer_norm_1pass(a, gamma, beta):
    # single pass over a (f32): sum and sum-of-squares issued back-to-back on the XLU
    inv_n = 1.0 / a.shape[-1]
    s1 = jnp.sum(a, axis=-1, keepdims=True)
    s2 = jnp.sum(a * a, axis=-1, keepdims=True)
    mean = s1 * inv_n
    var = jnp.maximum(s2 * inv_n - mean * mean, 0.0)
    xhat = (a - mean) * jax.lax.rsqrt(var + LN_EPS)
    return xhat * gamma + beta


def policy_kernel(nsub, sub,
                  x_ref,
                  w1_ref, b1_ref, g1_ref, be1_ref,
                  w2_ref, b2_ref, g2_ref, be2_ref,
                  w3_ref, b3_ref, g3_ref, be3_ref,
                  w4_ref, b4_ref,
                  w5_ref, b5_ref,
                  out_ref):
    # Process the batch tile as `nsub` row sub-blocks so the scheduler can overlap
    # MXU work of one sub-block with VPU/XLU (LN / softmax) work of another.
    for s in range(nsub):
        rows = pl.ds(s * sub, sub)
        h = x_ref[rows, :]  # f32

        # feature_extractor: 3x [Linear -> LeakyReLU -> LayerNorm]
        for w_ref, b_ref, g_ref, be_ref in (
                (w1_ref, b1_ref, g1_ref, be1_ref),
                (w2_ref, b2_ref, g2_ref, be2_ref),
                (w3_ref, b3_ref, g3_ref, be3_ref)):
            z = _leaky_relu(_linear_f32(h, w_ref, b_ref))                     # f32
            h = _layer_norm_1pass(z, g_ref[...], be_ref[...]).astype(ACT_DTYPE)

        # policy_head (lane-padded to 128 columns; padded logit bias = -1e30 -> exp()==0)
        h = _leaky_relu(_linear_f32(h, w4_ref, b4_ref)).astype(ACT_DTYPE)
        logits = _linear_f32(h, w5_ref, b5_ref)

        # numerically-stable softmax over the padded 128-wide lane dimension
        m = jnp.max(logits, axis=-1, keepdims=True)
        e = jnp.exp(logits - m)
        denom = jnp.sum(e, axis=-1, keepdims=True)
        out_ref[rows, :] = (e * pl.reciprocal(denom)).astype(out_ref.dtype)


@functools.partial(jax.jit, static_argnames=("num_actions", "tile_b"))
def policy_network_forward(x, params, *, num_actions, tile_b=4096):
    """x: (B, D_in) float32. params: dict from init_params. Returns (B, num_actions) f32."""
    B, d_in = x.shape
    a_pad = params["w5"].shape[1]  # lane-padded action dim (multiple of 128)

    # ---- batch tile selection -------------------------------------------------
    b8 = _round_up(max(B, 1), 8)
    tb = min(_round_up(tile_b, 8), b8)
    # megacore (v7x): keep >= 2 grid steps when batch is large enough so both
    # TensorCores get tiles; no-op on single-TC chips (v5e/v6e).
    if b8 >= 512 and pl.cdiv(b8, tb) < 2:
        tb = _round_up(pl.cdiv(b8, 2), 8)
    tb = max(8, tb)

    nsub = 2 if (tb >= 16 and tb % 16 == 0) else 1
    sub = tb // nsub

    # No wrapper-side padding of x: Pallas handles the partial last block
    # (rows past B only see row-independent math and are masked on writeback).
    grid = (pl.cdiv(B, tb),)

    flat_args = (
        x,
        params["w1"], params["b1"], params["g1"], params["be1"],
        params["w2"], params["b2"], params["g2"], params["be2"],
        params["w3"], params["b3"], params["g3"], params["be3"],
        params["w4"], params["b4"],
        params["w5"], params["b5"],
    )

    def const_spec(a):
        nd = a.ndim
        return pl.BlockSpec(a.shape, lambda i, _nd=nd: (0,) * _nd)

    in_specs = [pl.BlockSpec((tb, d_in), lambda i: (i, 0))]          # x: tiled over batch
    in_specs += [const_spec(a) for a in flat_args[1:]]               # weights: VMEM-resident
    out_spec = pl.BlockSpec((tb, a_pad), lambda i: (i, 0))           # lane-dense output

    out = pl.pallas_call(
        functools.partial(policy_kernel, nsub, sub),
        out_shape=jax.ShapeDtypeStruct((B, a_pad), jnp.float32),
        grid_spec=pltpu.PrefetchScalarGridSpec(
            num_scalar_prefetch=0,
            grid=grid,
            in_specs=in_specs,
            out_specs=out_spec,
        ),
        compiler_params=pltpu.CompilerParams(
            dimension_semantics=("parallel",),        # batch axis -> megacore on v7x
            vmem_limit_bytes=48 * 1024 * 1024,        # headroom for big tiles, < v7x 64 MiB
        ),
    )(*flat_args)

    return out[:, :num_actions]


def init_params(key, input_shape, num_actions, weight_dtype=jnp.bfloat16):
    """Synthetic init matching the PyTorch module's shapes.
    Linear weights stored transposed relative to PyTorch: (in, out), bf16 for the MXU.
    The policy head is lane-padded: w4/b4 out-dim 64 -> 128, w5/b5 out-dim -> 128 with
    zero weights and -1e30 bias on padded logit columns."""
    dims = [(input_shape, 512), (512, 256), (256, 128), (128, 64), (64, num_actions)]
    keys = jax.random.split(key, 2 * len(dims))
    params = {}
    for i, (din, dout) in enumerate(dims):
        scale = 1.0 / jnp.sqrt(jnp.float32(din))
        w = jax.random.uniform(keys[2 * i], (din, dout), jnp.float32, -scale, scale)
        b = jax.random.uniform(keys[2 * i + 1], (1, dout), jnp.float32, -scale, scale)
        params[f"w{i + 1}"] = w
        params[f"b{i + 1}"] = b
    # LayerNorm affine params (PyTorch init: gamma=1, beta=0) for layers 1..3 (kept f32)
    for i, dout in enumerate([512, 256, 128], start=1):
        params[f"g{i}"] = jnp.ones((1, dout), jnp.float32)
        params[f"be{i}"] = jnp.zeros((1, dout), jnp.float32)

    # lane-pad the policy head to 128 columns
    h4_pad = _round_up(64, LANE)
    a_pad = _round_up(num_actions, LANE)
    params["w4"] = jnp.pad(params["w4"], ((0, 0), (0, h4_pad - 64)))
    params["b4"] = jnp.pad(params["b4"], ((0, 0), (0, h4_pad - 64)))
    params["w5"] = jnp.pad(params["w5"], ((0, h4_pad - 64), (0, a_pad - num_actions)))
    params["b5"] = jnp.pad(params["b5"], ((0, 0), (0, a_pad - num_actions)),
                           constant_values=NEG_INF)

    # weights to bf16 for the MXU (halves weight DMA); biases / LN params stay f32
    for i in range(1, 6):
        params[f"w{i}"] = params[f"w{i}"].astype(weight_dtype)
    return params


def reference_forward(x, params, num_actions):
    """Plain-JAX reference using the same (padded, bf16-weight) params."""
    def leaky(v):
        return jnp.maximum(v, LEAKY_SLOPE * v)

    def ln(v, g, b):
        mean = jnp.mean(v, axis=-1, keepdims=True)
        var = jnp.mean((v - mean) ** 2, axis=-1, keepdims=True)
        return (v - mean) * jax.lax.rsqrt(var + LN_EPS) * g + b

    def lin(h, w, b):
        return jnp.dot(h.astype(w.dtype), w, preferred_element_type=jnp.float32) + b

    h = ln(leaky(lin(x, params["w1"], params["b1"])), params["g1"], params["be1"])
    h = ln(leaky(lin(h, params["w2"], params["b2"])), params["g2"], params["be2"])
    h = ln(leaky(lin(h, params["w3"], params["b3"])), params["g3"], params["be3"])
    h = leaky(lin(h, params["w4"], params["b4"]))
    logits = lin(h, params["w5"], params["b5"])
    return jax.nn.softmax(logits, axis=-1)[:, :num_actions]


if __name__ == "__main__":
    INPUT_SHAPE = 32   # nn.Linear(input_shape, 512)
    NUM_ACTIONS = 8
    BATCH = 24         # not a multiple of the tile -> exercises the partial last block

    key = jax.random.PRNGKey(0)
    k_x, k_p = jax.random.split(key)
    x = jax.random.normal(k_x, (BATCH, INPUT_SHAPE), jnp.float32)
    params = init_params(k_p, INPUT_SHAPE, NUM_ACTIONS)

    # small tile to exercise the batch grid (grid=(2,)) and sub-block loop (nsub=2);
    # real workloads use the default tile_b=4096 (megacore-capped when grid would be 1)
    probs = policy_network_forward(x, params, num_actions=NUM_ACTIONS, tile_b=16)
    probs = jax.block_until_ready(probs)

    assert probs.shape == (BATCH, NUM_ACTIONS)
    assert bool(jnp.all(jnp.isfinite(probs)))
    # rows of a softmax output should sum to ~1 (accurate reciprocal -> tight tol)
    assert jnp.allclose(jnp.sum(probs, axis=-1), 1.0, atol=1e-3)

    ref = reference_forward(x, params, NUM_ACTIONS)
    assert jnp.allclose(probs, ref, atol=2e-2), float(jnp.max(jnp.abs(probs - ref)))

    print("KERNEL_OK")
</pallas_src>

<mosaic_0001>
module attributes {stable_mosaic.version = 11 : i64} {
  func.func @policy_kernel(%arg0: i32, %arg1: memref<16x32xf32, #tpu.memory_space<vmem>>, %arg2: memref<32x512xbf16, #tpu.memory_space<vmem>>, %arg3: memref<1x512xf32, #tpu.memory_space<vmem>>, %arg4: memref<1x512xf32, #tpu.memory_space<vmem>>, %arg5: memref<1x512xf32, #tpu.memory_space<vmem>>, %arg6: memref<512x256xbf16, #tpu.memory_space<vmem>>, %arg7: memref<1x256xf32, #tpu.memory_space<vmem>>, %arg8: memref<1x256xf32, #tpu.memory_space<vmem>>, %arg9: memref<1x256xf32, #tpu.memory_space<vmem>>, %arg10: memref<256x128xbf16, #tpu.memory_space<vmem>>, %arg11: memref<1x128xf32, #tpu.memory_space<vmem>>, %arg12: memref<1x128xf32, #tpu.memory_space<vmem>>, %arg13: memref<1x128xf32, #tpu.memory_space<vmem>>, %arg14: memref<128x128xbf16, #tpu.memory_space<vmem>>, %arg15: memref<1x128xf32, #tpu.memory_space<vmem>>, %arg16: memref<128x128xbf16, #tpu.memory_space<vmem>>, %arg17: memref<1x128xf32, #tpu.memory_space<vmem>>, %arg18: memref<16x128xf32, #tpu.memory_space<vmem>>) attributes {dimension_semantics = [#tpu.dimension_semantics<parallel>], iteration_bounds = array<i64: 2>, scalar_prefetch = 0 : i64, scratch_operands = 0 : i64, tpu.core_type = #tpu.core_type<tc>, window_params = [{transform_indices = @transform_0, window_bounds = array<i64: 16, 32>}, {pipeline_mode = #tpu.pipeline_mode<synchronous>, transform_indices = @transform_1, window_bounds = array<i64: 32, 512>}, {pipeline_mode = #tpu.pipeline_mode<synchronous>, transform_indices = @transform_2, window_bounds = array<i64: 1, 512>}, {pipeline_mode = #tpu.pipeline_mode<synchronous>, transform_indices = @transform_3, window_bounds = array<i64: 1, 512>}, {pipeline_mode = #tpu.pipeline_mode<synchronous>, transform_indices = @transform_4, window_bounds = array<i64: 1, 512>}, {pipeline_mode = #tpu.pipeline_mode<synchronous>, transform_indices = @transform_5, window_bounds = array<i64: 512, 256>}, {pipeline_mode = #tpu.pipeline_mode<synchronous>, transform_indices = @transform_6, window_bounds = array<i64: 1, 256>}, {pipeline_mode = #tpu.pipeline_mode<synchronous>, transform_indices = @transform_7, window_bounds = array<i64: 1, 256>}, {pipeline_mode = #tpu.pipeline_mode<synchronous>, transform_indices = @transform_8, window_bounds = array<i64: 1, 256>}, {pipeline_mode = #tpu.pipeline_mode<synchronous>, transform_indices = @transform_9, window_bounds = array<i64: 256, 128>}, {pipeline_mode = #tpu.pipeline_mode<synchronous>, transform_indices = @transform_10, window_bounds = array<i64: 1, 128>}, {pipeline_mode = #tpu.pipeline_mode<synchronous>, transform_indices = @transform_11, window_bounds = array<i64: 1, 128>}, {pipeline_mode = #tpu.pipeline_mode<synchronous>, transform_indices = @transform_12, window_bounds = array<i64: 1, 128>}, {pipeline_mode = #tpu.pipeline_mode<synchronous>, transform_indices = @transform_13, window_bounds = array<i64: 128, 128>}, {pipeline_mode = #tpu.pipeline_mode<synchronous>, transform_indices = @transform_14, window_bounds = array<i64: 1, 128>}, {pipeline_mode = #tpu.pipeline_mode<synchronous>, transform_indices = @transform_15, window_bounds = array<i64: 128, 128>}, {pipeline_mode = #tpu.pipeline_mode<synchronous>, transform_indices = @transform_16, window_bounds = array<i64: 1, 128>}, {transform_indices = @transform_17, window_bounds = array<i64: 16, 128>}]} {
    %c0 = arith.constant 0 : index
    %c0_0 = arith.constant 0 : index
    %0 = vector.load %arg1[%c0, %c0_0] : memref<16x32xf32, #tpu.memory_space<vmem>>, vector<8x32xf32>
    %1 = arith.truncf %0 : vector<8x32xf32> to vector<8x32xbf16>
    %c0_1 = arith.constant 0 : index
    %c0_2 = arith.constant 0 : index
    %2 = vector.load %arg2[%c0_1, %c0_2] : memref<32x512xbf16, #tpu.memory_space<vmem>>, vector<32x512xbf16>
    %cst = arith.constant dense<0.000000e+00> : vector<8x512xf32>
    %3 = tpu.matmul %1, %2, %cst {dimension_numbers = #tpu.dot_dimension_numbers<[1], [0], [0], [1], [0, 0, 1, 1], [], []>} : vector<8x32xbf16>, vector<32x512xbf16>, vector<8x512xf32> -> vector<8x512xf32>
    %c0_3 = arith.constant 0 : index
    %c0_4 = arith.constant 0 : index
    %4 = vector.load %arg3[%c0_3, %c0_4] : memref<1x512xf32, #tpu.memory_space<vmem>>, vector<1x512xf32>
    %5 = vector.broadcast %4 : vector<1x512xf32> to vector<8x512xf32>
    %6 = arith.addf %3, %5 : vector<8x512xf32>
    %cst_5 = arith.constant 0.00999999977 : f32
    %7 = vector.broadcast %cst_5 : f32 to vector<8x512xf32>
    %8 = arith.mulf %7, %6 : vector<8x512xf32>
    %9 = arith.maximumf %6, %8 : vector<8x512xf32>
    %c0_6 = arith.constant 0 : index
    %c0_7 = arith.constant 0 : index
    %10 = vector.load %arg4[%c0_6, %c0_7] : memref<1x512xf32, #tpu.memory_space<vmem>>, vector<1x512xf32>
    %c0_8 = arith.constant 0 : index
    %c0_9 = arith.constant 0 : index
    %11 = vector.load %arg5[%c0_8, %c0_9] : memref<1x512xf32, #tpu.memory_space<vmem>>, vector<1x512xf32>
    %cst_10 = arith.constant dense<0.000000e+00> : vector<8xf32>
    %12 = vector.multi_reduction <add>, %9, %cst_10 [1] : vector<8x512xf32> to vector<8xf32>
    %13 = vector.shape_cast %12 : vector<8xf32> to vector<8x1xf32>
    %14 = arith.mulf %9, %9 : vector<8x512xf32>
    %cst_11 = arith.constant dense<0.000000e+00> : vector<8xf32>
    %15 = vector.multi_reduction <add>, %14, %cst_11 [1] : vector<8x512xf32> to vector<8xf32>
    %16 = vector.shape_cast %15 : vector<8xf32> to vector<8x1xf32>
    %cst_12 = arith.constant 0.001953125 : f32
    %17 = vector.broadcast %cst_12 : f32 to vector<8x1xf32>
    %18 = arith.mulf %13, %17 : vector<8x1xf32>
    %cst_13 = arith.constant 0.001953125 : f32
    %19 = vector.broadcast %cst_13 : f32 to vector<8x1xf32>
    %20 = arith.mulf %16, %19 : vector<8x1xf32>
    %21 = arith.mulf %18, %18 : vector<8x1xf32>
    %22 = arith.subf %20, %21 : vector<8x1xf32>
    %cst_14 = arith.constant 0.000000e+00 : f32
    %23 = vector.broadcast %cst_14 : f32 to vector<8x1xf32>
    %24 = arith.maximumf %22, %23 : vector<8x1xf32>
    %25 = vector.broadcast %18 : vector<8x1xf32> to vector<8x512xf32>
    %26 = arith.subf %9, %25 : vector<8x512xf32>
    %cst_15 = arith.constant 9.99999974E-6 : f32
    %27 = vector.broadcast %cst_15 : f32 to vector<8x1xf32>
    %28 = arith.addf %24, %27 : vector<8x1xf32>
    %29 = math.rsqrt %28 : vector<8x1xf32>
    %30 = vector.broadcast %29 : vector<8x1xf32> to vector<8x512xf32>
    %31 = arith.mulf %26, %30 : vector<8x512xf32>
    %32 = vector.broadcast %10 : vector<1x512xf32> to vector<8x512xf32>
    %33 = arith.mulf %31, %32 : vector<8x512xf32>
    %34 = vector.broadcast %11 : vector<1x512xf32> to vector<8x512xf32>
    %35 = arith.addf %33, %34 : vector<8x512xf32>
    %36 = arith.truncf %35 : vector<8x512xf32> to vector<8x512xbf16>
    %c0_16 = arith.constant 0 : index
    %c0_17 = arith.constant 0 : index
    %37 = vector.load %arg6[%c0_16, %c0_17] : memref<512x256xbf16, #tpu.memory_space<vmem>>, vector<512x256xbf16>
    %cst_18 = arith.constant dense<0.000000e+00> : vector<8x256xf32>
    %38 = tpu.matmul %36, %37, %cst_18 {dimension_numbers = #tpu.dot_dimension_numbers<[1], [0], [0], [1], [0, 0, 1, 1], [], []>} : vector<8x512xbf16>, vector<512x256xbf16>, vector<8x256xf32> -> vector<8x256xf32>
    %c0_19 = arith.constant 0 : index
    %c0_20 = arith.constant 0 : index
    %39 = vector.load %arg7[%c0_19, %c0_20] : memref<1x256xf32, #tpu.memory_space<vmem>>, vector<1x256xf32>
    %40 = vector.broadcast %39 : vector<1x256xf32> to vector<8x256xf32>
    %41 = arith.addf %38, %40 : vector<8x256xf32>
    %cst_21 = arith.constant 0.00999999977 : f32
    %42 = vector.broadcast %cst_21 : f32 to vector<8x256xf32>
    %43 = arith.mulf %42, %41 : vector<8x256xf32>
    %44 = arith.maximumf %41, %43 : vector<8x256xf32>
    %c0_22 = arith.constant 0 : index
    %c0_23 = arith.constant 0 : index
    %45 = vector.load %arg8[%c0_22, %c0_23] : memref<1x256xf32, #tpu.memory_space<vmem>>, vector<1x256xf32>
    %c0_24 = arith.constant 0 : index
    %c0_25 = arith.constant 0 : index
    %46 = vector.load %arg9[%c0_24, %c0_25] : memref<1x256xf32, #tpu.memory_space<vmem>>, vector<1x256xf32>
    %cst_26 = arith.constant dense<0.000000e+00> : vector<8xf32>
    %47 = vector.multi_reduction <add>, %44, %cst_26 [1] : vector<8x256xf32> to vector<8xf32>
    %48 = vector.shape_cast %47 : vector<8xf32> to vector<8x1xf32>
    %49 = arith.mulf %44, %44 : vector<8x256xf32>
    %cst_27 = arith.constant dense<0.000000e+00> : vector<8xf32>
    %50 = vector.multi_reduction <add>, %49, %cst_27 [1] : vector<8x256xf32> to vector<8xf32>
    %51 = vector.shape_cast %50 : vector<8xf32> to vector<8x1xf32>
    %cst_28 = arith.constant 3.906250e-03 : f32
    %52 = vector.broadcast %cst_28 : f32 to vector<8x1xf32>
    %53 = arith.mulf %48, %52 : vector<8x1xf32>
    %cst_29 = arith.constant 3.906250e-03 : f32
    %54 = vector.broadcast %cst_29 : f32 to vector<8x1xf32>
    %55 = arith.mulf %51, %54 : vector<8x1xf32>
    %56 = arith.mulf %53, %53 : vector<8x1xf32>
    %57 = arith.subf %55, %56 : vector<8x1xf32>
    %cst_30 = arith.constant 0.000000e+00 : f32
    %58 = vector.broadcast %cst_30 : f32 to vector<8x1xf32>
    %59 = arith.maximumf %57, %58 : vector<8x1xf32>
    %60 = vector.broadcast %53 : vector<8x1xf32> to vector<8x256xf32>
    %61 = arith.subf %44, %60 : vector<8x256xf32>
    %cst_31 = arith.constant 9.99999974E-6 : f32
    %62 = vector.broadcast %cst_31 : f32 to vector<8x1xf32>
    %63 = arith.addf %59, %62 : vector<8x1xf32>
    %64 = math.rsqrt %63 : vector<8x1xf32>
    %65 = vector.broadcast %64 : vector<8x1xf32> to vector<8x256xf32>
    %66 = arith.mulf %61, %65 : vector<8x256xf32>
    %67 = vector.broadcast %45 : vector<1x256xf32> to vector<8x256xf32>
    %68 = arith.mulf %66, %67 : vector<8x256xf32>
    %69 = vector.broadcast %46 : vector<1x256xf32> to vector<8x256xf32>
    %70 = arith.addf %68, %69 : vector<8x256xf32>
    %71 = arith.truncf %70 : vector<8x256xf32> to vector<8x256xbf16>
    %c0_32 = arith.constant 0 : index
    %c0_33 = arith.constant 0 : index
    %72 = vector.load %arg10[%c0_32, %c0_33] : memref<256x128xbf16, #tpu.memory_space<vmem>>, vector<256x128xbf16>
    %cst_34 = arith.constant dense<0.000000e+00> : vector<8x128xf32>
    %73 = tpu.matmul %71, %72, %cst_34 {dimension_numbers = #tpu.dot_dimension_numbers<[1], [0], [0], [1], [0, 0, 1, 1], [], []>} : vector<8x256xbf16>, vector<256x128xbf16>, vector<8x128xf32> -> vector<8x128xf32>
    %c0_35 = arith.constant 0 : index
    %c0_36 = arith.constant 0 : index
    %74 = vector.load %arg11[%c0_35, %c0_36] : memref<1x128xf32, #tpu.memory_space<vmem>>, vector<1x128xf32>
    %75 = vector.broadcast %74 : vector<1x128xf32> to vector<8x128xf32>
    %76 = arith.addf %73, %75 : vector<8x128xf32>
    %cst_37 = arith.constant 0.00999999977 : f32
    %77 = vector.broadcast %cst_37 : f32 to vector<8x128xf32>
    %78 = arith.mulf %77, %76 : vector<8x128xf32>
    %79 = arith.maximumf %76, %78 : vector<8x128xf32>
    %c0_38 = arith.constant 0 : index
    %c0_39 = arith.constant 0 : index
    %80 = vector.load %arg12[%c0_38, %c0_39] : memref<1x128xf32, #tpu.memory_space<vmem>>, vector<1x128xf32>
    %c0_40 = arith.constant 0 : index
    %c0_41 = arith.constant 0 : index
    %81 = vector.load %arg13[%c0_40, %c0_41] : memref<1x128xf32, #tpu.memory_space<vmem>>, vector<1x128xf32>
    %cst_42 = arith.constant dense<0.000000e+00> : vector<8xf32>
    %82 = vector.multi_reduction <add>, %79, %cst_42 [1] : vector<8x128xf32> to vector<8xf32>
    %83 = vector.shape_cast %82 : vector<8xf32> to vector<8x1xf32>
    %84 = arith.mulf %79, %79 : vector<8x128xf32>
    %cst_43 = arith.constant dense<0.000000e+00> : vector<8xf32>
    %85 = vector.multi_reduction <add>, %84, %cst_43 [1] : vector<8x128xf32> to vector<8xf32>
    %86 = vector.shape_cast %85 : vector<8xf32> to vector<8x1xf32>
    %cst_44 = arith.constant 7.812500e-03 : f32
    %87 = vector.broadcast %cst_44 : f32 to vector<8x1xf32>
    %88 = arith.mulf %83, %87 : vector<8x1xf32>
    %cst_45 = arith.constant 7.812500e-03 : f32
    %89 = vector.broadcast %cst_45 : f32 to vector<8x1xf32>
    %90 = arith.mulf %86, %89 : vector<8x1xf32>
    %91 = arith.mulf %88, %88 : vector<8x1xf32>
    %92 = arith.subf %90, %91 : vector<8x1xf32>
    %cst_46 = arith.constant 0.000000e+00 : f32
    %93 = vector.broadcast %cst_46 : f32 to vector<8x1xf32>
    %94 = arith.maximumf %92, %93 : vector<8x1xf32>
    %95 = vector.broadcast %88 : vector<8x1xf32> to vector<8x128xf32>
    %96 = arith.subf %79, %95 : vector<8x128xf32>
    %cst_47 = arith.constant 9.99999974E-6 : f32
    %97 = vector.broadcast %cst_47 : f32 to vector<8x1xf32>
    %98 = arith.addf %94, %97 : vector<8x1xf32>
    %99 = math.rsqrt %98 : vector<8x1xf32>
    %100 = vector.broadcast %99 : vector<8x1xf32> to vector<8x128xf32>
    %101 = arith.mulf %96, %100 : vector<8x128xf32>
    %102 = vector.broadcast %80 : vector<1x128xf32> to vector<8x128xf32>
    %103 = arith.mulf %101, %102 : vector<8x128xf32>
    %104 = vector.broadcast %81 : vector<1x128xf32> to vector<8x128xf32>
    %105 = arith.addf %103, %104 : vector<8x128xf32>
    %106 = arith.truncf %105 : vector<8x128xf32> to vector<8x128xbf16>
    %c0_48 = arith.constant 0 : index
    %c0_49 = arith.constant 0 : index
    %107 = vector.load %arg14[%c0_48, %c0_49] : memref<128x128xbf16, #tpu.memory_space<vmem>>, vector<128x128xbf16>
    %cst_50 = arith.constant dense<0.000000e+00> : vector<8x128xf32>
    %108 = tpu.matmul %106, %107, %cst_50 {dimension_numbers = #tpu.dot_dimension_numbers<[1], [0], [0], [1], [0, 0, 1, 1], [], []>} : vector<8x128xbf16>, vector<128x128xbf16>, vector<8x128xf32> -> vector<8x128xf32>
    %c0_51 = arith.constant 0 : index
    %c0_52 = arith.constant 0 : index
    %109 = vector.load %arg15[%c0_51, %c0_52] : memref<1x128xf32, #tpu.memory_space<vmem>>, vector<1x128xf32>
    %110 = vector.broadcast %109 : vector<1x128xf32> to vector<8x128xf32>
    %111 = arith.addf %108, %110 : vector<8x128xf32>
    %cst_53 = arith.constant 0.00999999977 : f32
    %112 = vector.broadcast %cst_53 : f32 to vector<8x128xf32>
    %113 = arith.mulf %112, %111 : vector<8x128xf32>
    %114 = arith.maximumf %111, %113 : vector<8x128xf32>
    %115 = arith.truncf %114 : vector<8x128xf32> to vector<8x128xbf16>
    %c0_54 = arith.constant 0 : index
    %c0_55 = arith.constant 0 : index
    %116 = vector.load %arg16[%c0_54, %c0_55] : memref<128x128xbf16, #tpu.memory_space<vmem>>, vector<128x128xbf16>
    %cst_56 = arith.constant dense<0.000000e+00> : vector<8x128xf32>
    %117 = tpu.matmul %115, %116, %cst_56 {dimension_numbers = #tpu.dot_dimension_numbers<[1], [0], [0], [1], [0, 0, 1, 1], [], []>} : vector<8x128xbf16>, vector<128x128xbf16>, vector<8x128xf32> -> vector<8x128xf32>
    %c0_57 = arith.constant 0 : index
    %c0_58 = arith.constant 0 : index
    %118 = vector.load %arg17[%c0_57, %c0_58] : memref<1x128xf32, #tpu.memory_space<vmem>>, vector<1x128xf32>
    %119 = vector.broadcast %118 : vector<1x128xf32> to vector<8x128xf32>
    %120 = arith.addf %117, %119 : vector<8x128xf32>
    %cst_59 = arith.constant dense<0xFF800000> : vector<8xf32>
    %121 = vector.multi_reduction <maximumf>, %120, %cst_59 [1] : vector<8x128xf32> to vector<8xf32>
    %122 = vector.shape_cast %121 : vector<8xf32> to vector<8x1xf32>
    %123 = vector.broadcast %122 : vector<8x1xf32> to vector<8x128xf32>
    %124 = arith.subf %120, %123 : vector<8x128xf32>
    %125 = math.exp %124 : vector<8x128xf32>
    %cst_60 = arith.constant dense<0.000000e+00> : vector<8xf32>
    %126 = vector.multi_reduction <add>, %125, %cst_60 [1] : vector<8x128xf32> to vector<8xf32>
    %127 = vector.shape_cast %126 : vector<8xf32> to vector<8x1xf32>
    %128 = tpu.reciprocal %127 : vector<8x1xf32> -> vector<8x1xf32>
    %129 = vector.broadcast %128 : vector<8x1xf32> to vector<8x128xf32>
    %130 = arith.mulf %125, %129 : vector<8x128xf32>
    %c0_61 = arith.constant 0 : index
    %c0_62 = arith.constant 0 : index
    %131 = vector.load %arg18[%c0_61, %c0_62] : memref<16x128xf32, #tpu.memory_space<vmem>>, vector<8x128xf32>
    tpu.vector_store %arg18[%c0_61, %c0_62], %130 {strides = array<i32>} : memref<16x128xf32, #tpu.memory_space<vmem>>, vector<8x128xf32>,
    %c8 = arith.constant 8 : index
    %c0_63 = arith.constant 0 : index
    %132 = vector.load %arg1[%c8, %c0_63] : memref<16x32xf32, #tpu.memory_space<vmem>>, vector<8x32xf32>
    %133 = arith.truncf %132 : vector<8x32xf32> to vector<8x32xbf16>
    %c0_64 = arith.constant 0 : index
    %c0_65 = arith.constant 0 : index
    %134 = vector.load %arg2[%c0_64, %c0_65] : memref<32x512xbf16, #tpu.memory_space<vmem>>, vector<32x512xbf16>
    %cst_66 = arith.constant dense<0.000000e+00> : vector<8x512xf32>
    %135 = tpu.matmul %133, %134, %cst_66 {dimension_numbers = #tpu.dot_dimension_numbers<[1], [0], [0], [1], [0, 0, 1, 1], [], []>} : vector<8x32xbf16>, vector<32x512xbf16>, vector<8x512xf32> -> vector<8x512xf32>
    %c0_67 = arith.constant 0 : index
    %c0_68 = arith.constant 0 : index
    %136 = vector.load %arg3[%c0_67, %c0_68] : memref<1x512xf32, #tpu.memory_space<vmem>>, vector<1x512xf32>
    %137 = vector.broadcast %136 : vector<1x512xf32> to vector<8x512xf32>
    %138 = arith.addf %135, %137 : vector<8x512xf32>
    %cst_69 = arith.constant 0.00999999977 : f32
    %139 = vector.broadcast %cst_69 : f32 to vector<8x512xf32>
    %140 = arith.mulf %139, %138 : vector<8x512xf32>
    %141 = arith.maximumf %138, %140 : vector<8x512xf32>
    %c0_70 = arith.constant 0 : index
    %c0_71 = arith.constant 0 : index
    %142 = vector.load %arg4[%c0_70, %c0_71] : memref<1x512xf32, #tpu.memory_space<vmem>>, vector<1x512xf32>
    %c0_72 = arith.constant 0 : index
    %c0_73 = arith.constant 0 : index
    %143 = vector.load %arg5[%c0_72, %c0_73] : memref<1x512xf32, #tpu.memory_space<vmem>>, vector<1x512xf32>
    %cst_74 = arith.constant dense<0.000000e+00> : vector<8xf32>
    %144 = vector.multi_reduction <add>, %141, %cst_74 [1] : vector<8x512xf32> to vector<8xf32>
    %145 = vector.shape_cast %144 : vector<8xf32> to vector<8x1xf32>
    %146 = arith.mulf %141, %141 : vector<8x512xf32>
    %cst_75 = arith.constant dense<0.000000e+00> : vector<8xf32>
    %147 = vector.multi_reduction <add>, %146, %cst_75 [1] : vector<8x512xf32> to vector<8xf32>
    %148 = vector.shape_cast %147 : vector<8xf32> to vector<8x1xf32>
    %cst_76 = arith.constant 0.001953125 : f32
    %149 = vector.broadcast %cst_76 : f32 to vector<8x1xf32>
    %150 = arith.mulf %145, %149 : vector<8x1xf32>
    %cst_77 = arith.constant 0.001953125 : f32
    %151 = vector.broadcast %cst_77 : f32 to vector<8x1xf32>
    %152 = arith.mulf %148, %151 : vector<8x1xf32>
    %153 = arith.mulf %150, %150 : vector<8x1xf32>
    %154 = arith.subf %152, %153 : vector<8x1xf32>
    %cst_78 = arith.constant 0.000000e+00 : f32
    %155 = vector.broadcast %cst_78 : f32 to vector<8x1xf32>
    %156 = arith.maximumf %154, %155 : vector<8x1xf32>
    %157 = vector.broadcast %150 : vector<8x1xf32> to vector<8x512xf32>
    %158 = arith.subf %141, %157 : vector<8x512xf32>
    %cst_79 = arith.constant 9.99999974E-6 : f32
    %159 = vector.broadcast %cst_79 : f32 to vector<8x1xf32>
    %160 = arith.addf %156, %159 : vector<8x1xf32>
    %161 = math.rsqrt %160 : vector<8x1xf32>
    %162 = vector.broadcast %161 : vector<8x1xf32> to vector<8x512xf32>
    %163 = arith.mulf %158, %162 : vector<8x512xf32>
    %164 = vector.broadcast %142 : vector<1x512xf32> to vector<8x512xf32>
    %165 = arith.mulf %163, %164 : vector<8x512xf32>
    %166 = vector.broadcast %143 : vector<1x512xf32> to vector<8x512xf32>
    %167 = arith.addf %165, %166 : vector<8x512xf32>
    %168 = arith.truncf %167 : vector<8x512xf32> to vector<8x512xbf16>
    %c0_80 = arith.constant 0 : index
    %c0_81 = arith.constant 0 : index
    %169 = vector.load %arg6[%c0_80, %c0_81] : memref<512x256xbf16, #tpu.memory_space<vmem>>, vector<512x256xbf16>
    %cst_82 = arith.constant dense<0.000000e+00> : vector<8x256xf32>
    %170 = tpu.matmul %168, %169, %cst_82 {dimension_numbers = #tpu.dot_dimension_numbers<[1], [0], [0], [1], [0, 0, 1, 1], [], []>} : vector<8x512xbf16>, vector<512x256xbf16>, vector<8x256xf32> -> vector<8x256xf32>
    %c0_83 = arith.constant 0 : index
    %c0_84 = arith.constant 0 : index
    %171 = vector.load %arg7[%c0_83, %c0_84] : memref<1x256xf32, #tpu.memory_space<vmem>>, vector<1x256xf32>
    %172 = vector.broadcast %171 : vector<1x256xf32> to vector<8x256xf32>
    %173 = arith.addf %170, %172 : vector<8x256xf32>
    %cst_85 = arith.constant 0.00999999977 : f32
    %174 = vector.broadcast %cst_85 : f32 to vector<8x256xf32>
    %175 = arith.mulf %174, %173 : vector<8x256xf32>
    %176 = arith.maximumf %173, %175 : vector<8x256xf32>
    %c0_86 = arith.constant 0 : index
    %c0_87 = arith.constant 0 : index
    %177 = vector.load %arg8[%c0_86, %c0_87] : memref<1x256xf32, #tpu.memory_space<vmem>>, vector<1x256xf32>
    %c0_88 = arith.constant 0 : index
    %c0_89 = arith.constant 0 : index
    %178 = vector.load %arg9[%c0_88, %c0_89] : memref<1x256xf32, #tpu.memory_space<vmem>>, vector<1x256xf32>
    %cst_90 = arith.constant dense<0.000000e+00> : vector<8xf32>
    %179 = vector.multi_reduction <add>, %176, %cst_90 [1] : vector<8x256xf32> to vector<8xf32>
    %180 = vector.shape_cast %179 : vector<8xf32> to vector<8x1xf32>
    %181 = arith.mulf %176, %176 : vector<8x256xf32>
    %cst_91 = arith.constant dense<0.000000e+00> : vector<8xf32>
    %182 = vector.multi_reduction <add>, %181, %cst_91 [1] : vector<8x256xf32> to vector<8xf32>
    %183 = vector.shape_cast %182 : vector<8xf32> to vector<8x1xf32>
    %cst_92 = arith.constant 3.906250e-03 : f32
    %184 = vector.broadcast %cst_92 : f32 to vector<8x1xf32>
    %185 = arith.mulf %180, %184 : vector<8x1xf32>
    %cst_93 = arith.constant 3.906250e-03 : f32
    %186 = vector.broadcast %cst_93 : f32 to vector<8x1xf32>
    %187 = arith.mulf %183, %186 : vector<8x1xf32>
    %188 = arith.mulf %185, %185 : vector<8x1xf32>
    %189 = arith.subf %187, %188 : vector<8x1xf32>
    %cst_94 = arith.constant 0.000000e+00 : f32
    %190 = vector.broadcast %cst_94 : f32 to vector<8x1xf32>
    %191 = arith.maximumf %189, %190 : vector<8x1xf32>
    %192 = vector.broadcast %185 : vector<8x1xf32> to vector<8x256xf32>
    %193 = arith.subf %176, %192 : vector<8x256xf32>
    %cst_95 = arith.constant 9.99999974E-6 : f32
    %194 = vector.broadcast %cst_95 : f32 to vector<8x1xf32>
    %195 = arith.addf %191, %194 : vector<8x1xf32>
    %196 = math.rsqrt %195 : vector<8x1xf32>
    %197 = vector.broadcast %196 : vector<8x1xf32> to vector<8x256xf32>
    %198 = arith.mulf %193, %197 : vector<8x256xf32>
    %199 = vector.broadcast %177 : vector<1x256xf32> to vector<8x256xf32>
    %200 = arith.mulf %198, %199 : vector<8x256xf32>
    %201 = vector.broadcast %178 : vector<1x256xf32> to vector<8x256xf32>
    %202 = arith.addf %200, %201 : vector<8x256xf32>
    %203 = arith.truncf %202 : vector<8x256xf32> to vector<8x256xbf16>
    %c0_96 = arith.constant 0 : index
    %c0_97 = arith.constant 0 : index
    %204 = vector.load %arg10[%c0_96, %c0_97] : memref<256x128xbf16, #tpu.memory_space<vmem>>, vector<256x128xbf16>
    %cst_98 = arith.constant dense<0.000000e+00> : vector<8x128xf32>
    %205 = tpu.matmul %203, %204, %cst_98 {dimension_numbers = #tpu.dot_dimension_numbers<[1], [0], [0], [1], [0, 0, 1, 1], [], []>} : vector<8x256xbf16>, vector<256x128xbf16>, vector<8x128xf32> -> vector<8x128xf32>
    %c0_99 = arith.constant 0 : index
    %c0_100 = arith.constant 0 : index
    %206 = vector.load %arg11[%c0_99, %c0_100] : memref<1x128xf32, #tpu.memory_space<vmem>>, vector<1x128xf32>
    %207 = vector.broadcast %206 : vector<1x128xf32> to vector<8x128xf32>
    %208 = arith.addf %205, %207 : vector<8x128xf32>
    %cst_101 = arith.constant 0.00999999977 : f32
    %209 = vector.broadcast %cst_101 : f32 to vector<8x128xf32>
    %210 = arith.mulf %209, %208 : vector<8x128xf32>
    %211 = arith.maximumf %208, %210 : vector<8x128xf32>
    %c0_102 = arith.constant 0 : index
    %c0_103 = arith.constant 0 : index
    %212 = vector.load %arg12[%c0_102, %c0_103] : memref<1x128xf32, #tpu.memory_space<vmem>>, vector<1x128xf32>
    %c0_104 = arith.constant 0 : index
    %c0_105 = arith.constant 0 : index
    %213 = vector.load %arg13[%c0_104, %c0_105] : memref<1x128xf32, #tpu.memory_space<vmem>>, vector<1x128xf32>
    %cst_106 = arith.constant dense<0.000000e+00> : vector<8xf32>
    %214 = vector.multi_reduction <add>, %211, %cst_106 [1] : vector<8x128xf32> to vector<8xf32>
    %215 = vector.shape_cast %214 : vector<8xf32> to vector<8x1xf32>
    %216 = arith.mulf %211, %211 : vector<8x128xf32>
    %cst_107 = arith.constant dense<0.000000e+00> : vector<8xf32>
    %217 = vector.multi_reduction <add>, %216, %cst_107 [1] : vector<8x128xf32> to vector<8xf32>
    %218 = vector.shape_cast %217 : vector<8xf32> to vector<8x1xf32>
    %cst_108 = arith.constant 7.812500e-03 : f32
    %219 = vector.broadcast %cst_108 : f32 to vector<8x1xf32>
    %220 = arith.mulf %215, %219 : vector<8x1xf32>
    %cst_109 = arith.constant 7.812500e-03 : f32
    %221 = vector.broadcast %cst_109 : f32 to vector<8x1xf32>
    %222 = arith.mulf %218, %221 : vector<8x1xf32>
    %223 = arith.mulf %220, %220 : vector<8x1xf32>
    %224 = arith.subf %222, %223 : vector<8x1xf32>
    %cst_110 = arith.constant 0.000000e+00 : f32
    %225 = vector.broadcast %cst_110 : f32 to vector<8x1xf32>
    %226 = arith.maximumf %224, %225 : vector<8x1xf32>
    %227 = vector.broadcast %220 : vector<8x1xf32> to vector<8x128xf32>
    %228 = arith.subf %211, %227 : vector<8x128xf32>
    %cst_111 = arith.constant 9.99999974E-6 : f32
    %229 = vector.broadcast %cst_111 : f32 to vector<8x1xf32>
    %230 = arith.addf %226, %229 : vector<8x1xf32>
    %231 = math.rsqrt %230 : vector<8x1xf32>
    %232 = vector.broadcast %231 : vector<8x1xf32> to vector<8x128xf32>
    %233 = arith.mulf %228, %232 : vector<8x128xf32>
    %234 = vector.broadcast %212 : vector<1x128xf32> to vector<8x128xf32>
    %235 = arith.mulf %233, %234 : vector<8x128xf32>
    %236 = vector.broadcast %213 : vector<1x128xf32> to vector<8x128xf32>
    %237 = arith.addf %235, %236 : vector<8x128xf32>
    %238 = arith.truncf %237 : vector<8x128xf32> to vector<8x128xbf16>
    %c0_112 = arith.constant 0 : index
    %c0_113 = arith.constant 0 : index
    %239 = vector.load %arg14[%c0_112, %c0_113] : memref<128x128xbf16, #tpu.memory_space<vmem>>, vector<128x128xbf16>
    %cst_114 = arith.constant dense<0.000000e+00> : vector<8x128xf32>
    %240 = tpu.matmul %238, %239, %cst_114 {dimension_numbers = #tpu.dot_dimension_numbers<[1], [0], [0], [1], [0, 0, 1, 1], [], []>} : vector<8x128xbf16>, vector<128x128xbf16>, vector<8x128xf32> -> vector<8x128xf32>
    %c0_115 = arith.constant 0 : index
    %c0_116 = arith.constant 0 : index
    %241 = vector.load %arg15[%c0_115, %c0_116] : memref<1x128xf32, #tpu.memory_space<vmem>>, vector<1x128xf32>
    %242 = vector.broadcast %241 : vector<1x128xf32> to vector<8x128xf32>
    %243 = arith.addf %240, %242 : vector<8x128xf32>
    %cst_117 = arith.constant 0.00999999977 : f32
    %244 = vector.broadcast %cst_117 : f32 to vector<8x128xf32>
    %245 = arith.mulf %244, %243 : vector<8x128xf32>
    %246 = arith.maximumf %243, %245 : vector<8x128xf32>
    %247 = arith.truncf %246 : vector<8x128xf32> to vector<8x128xbf16>
    %c0_118 = arith.constant 0 : index
    %c0_119 = arith.constant 0 : index
    %248 = vector.load %arg16[%c0_118, %c0_119] : memref<128x128xbf16, #tpu.memory_space<vmem>>, vector<128x128xbf16>
    %cst_120 = arith.constant dense<0.000000e+00> : vector<8x128xf32>
    %249 = tpu.matmul %247, %248, %cst_120 {dimension_numbers = #tpu.dot_dimension_numbers<[1], [0], [0], [1], [0, 0, 1, 1], [], []>} : vector<8x128xbf16>, vector<128x128xbf16>, vector<8x128xf32> -> vector<8x128xf32>
    %c0_121 = arith.constant 0 : index
    %c0_122 = arith.constant 0 : index
    %250 = vector.load %arg17[%c0_121, %c0_122] : memref<1x128xf32, #tpu.memory_space<vmem>>, vector<1x128xf32>
    %251 = vector.broadcast %250 : vector<1x128xf32> to vector<8x128xf32>
    %252 = arith.addf %249, %251 : vector<8x128xf32>
    %cst_123 = arith.constant dense<0xFF800000> : vector<8xf32>
    %253 = vector.multi_reduction <maximumf>, %252, %cst_123 [1] : vector<8x128xf32> to vector<8xf32>
    %254 = vector.shape_cast %253 : vector<8xf32> to vector<8x1xf32>
    %255 = vector.broadcast %254 : vector<8x1xf32> to vector<8x128xf32>
    %256 = arith.subf %252, %255 : vector<8x128xf32>
    %257 = math.exp %256 : vector<8x128xf32>
    %cst_124 = arith.constant dense<0.000000e+00> : vector<8xf32>
    %258 = vector.multi_reduction <add>, %257, %cst_124 [1] : vector<8x128xf32> to vector<8xf32>
    %259 = vector.shape_cast %258 : vector<8xf32> to vector<8x1xf32>
    %260 = tpu.reciprocal %259 : vector<8x1xf32> -> vector<8x1xf32>
    %261 = vector.broadcast %260 : vector<8x1xf32> to vector<8x128xf32>
    %262 = arith.mulf %257, %261 : vector<8x128xf32>
    %c8_125 = arith.constant 8 : index
    %c0_126 = arith.constant 0 : index
    %263 = vector.load %arg18[%c8_125, %c0_126] : memref<16x128xf32, #tpu.memory_space<vmem>>, vector<8x128xf32>
    tpu.vector_store %arg18[%c8_125, %c0_126], %262 {strides = array<i32>} : memref<16x128xf32, #tpu.memory_space<vmem>>, vector<8x128xf32>,
    return
  }
  func.func @transform_0(%arg0: i32) -> (i32, i32) {
    %c0_i32 = arith.constant 0 : i32
    %c0_i32_0 = arith.constant 0 : i32
    return %arg0, %c0_i32 : i32, i32
  }
  func.func @transform_1(%arg0: i32) -> (i32, i32) {
    %c0_i32 = arith.constant 0 : i32
    %c0_i32_0 = arith.constant 0 : i32
    %c0_i32_1 = arith.constant 0 : i32
    return %c0_i32, %c0_i32_0 : i32, i32
  }
  func.func @transform_2(%arg0: i32) -> (i32, i32) {
    %c0_i32 = arith.constant 0 : i32
    %c0_i32_0 = arith.constant 0 : i32
    %c0_i32_1 = arith.constant 0 : i32
    return %c0_i32, %c0_i32_0 : i32, i32
  }
  func.func @transform_3(%arg0: i32) -> (i32, i32) {
    %c0_i32 = arith.constant 0 : i32
    %c0_i32_0 = arith.constant 0 : i32
    %c0_i32_1 = arith.constant 0 : i32
    return %c0_i32, %c0_i32_0 : i32, i32
  }
  func.func @transform_4(%arg0: i32) -> (i32, i32) {
    %c0_i32 = arith.constant 0 : i32
    %c0_i32_0 = arith.constant 0 : i32
    %c0_i32_1 = arith.constant 0 : i32
    return %c0_i32, %c0_i32_0 : i32, i32
  }
  func.func @transform_5(%arg0: i32) -> (i32, i32) {
    %c0_i32 = arith.constant 0 : i32
    %c0_i32_0 = arith.constant 0 : i32
    %c0_i32_1 = arith.constant 0 : i32
    return %c0_i32, %c0_i32_0 : i32, i32
  }
  func.func @transform_6(%arg0: i32) -> (i32, i32) {
    %c0_i32 = arith.constant 0 : i32
    %c0_i32_0 = arith.constant 0 : i32
    %c0_i32_1 = arith.constant 0 : i32
    return %c0_i32, %c0_i32_0 : i32, i32
  }
  func.func @transform_7(%arg0: i32) -> (i32, i32) {
    %c0_i32 = arith.constant 0 : i32
    %c0_i32_0 = arith.constant 0 : i32
    %c0_i32_1 = arith.constant 0 : i32
    return %c0_i32, %c0_i32_0 : i32, i32
  }
  func.func @transform_8(%arg0: i32) -> (i32, i32) {
    %c0_i32 = arith.constant 0 : i32
    %c0_i32_0 = arith.constant 0 : i32
    %c0_i32_1 = arith.constant 0 : i32
    return %c0_i32, %c0_i32_0 : i32, i32
  }
  func.func @transform_9(%arg0: i32) -> (i32, i32) {
    %c0_i32 = arith.constant 0 : i32
    %c0_i32_0 = arith.constant 0 : i32
    %c0_i32_1 = arith.constant 0 : i32
    return %c0_i32, %c0_i32_0 : i32, i32
  }
  func.func @transform_10(%arg0: i32) -> (i32, i32) {
    %c0_i32 = arith.constant 0 : i32
    %c0_i32_0 = arith.constant 0 : i32
    %c0_i32_1 = arith.constant 0 : i32
    return %c0_i32, %c0_i32_0 : i32, i32
  }
  func.func @transform_11(%arg0: i32) -> (i32, i32) {
    %c0_i32 = arith.constant 0 : i32
    %c0_i32_0 = arith.constant 0 : i32
    %c0_i32_1 = arith.constant 0 : i32
    return %c0_i32, %c0_i32_0 : i32, i32
  }
  func.func @transform_12(%arg0: i32) -> (i32, i32) {
    %c0_i32 = arith.constant 0 : i32
    %c0_i32_0 = arith.constant 0 : i32
    %c0_i32_1 = arith.constant 0 : i32
    return %c0_i32, %c0_i32_0 : i32, i32
  }
  func.func @transform_13(%arg0: i32) -> (i32, i32) {
    %c0_i32 = arith.constant 0 : i32
    %c0_i32_0 = arith.constant 0 : i32
    %c0_i32_1 = arith.constant 0 : i32
    return %c0_i32, %c0_i32_0 : i32, i32
  }
  func.func @transform_14(%arg0: i32) -> (i32, i32) {
    %c0_i32 = arith.constant 0 : i32
    %c0_i32_0 = arith.constant 0 : i32
    %c0_i32_1 = arith.constant 0 : i32
    return %c0_i32, %c0_i32_0 : i32, i32
  }
  func.func @transform_15(%arg0: i32) -> (i32, i32) {
    %c0_i32 = arith.constant 0 : i32
    %c0_i32_0 = arith.constant 0 : i32
    %c0_i32_1 = arith.constant 0 : i32
    return %c0_i32, %c0_i32_0 : i32, i32
  }
  func.func @transform_16(%arg0: i32) -> (i32, i32) {
    %c0_i32 = arith.constant 0 : i32
    %c0_i32_0 = arith.constant 0 : i32
    %c0_i32_1 = arith.constant 0 : i32
    return %c0_i32, %c0_i32_0 : i32, i32
  }
  func.func @transform_17(%arg0: i32) -> (i32, i32) {
    %c0_i32 = arith.constant 0 : i32
    %c0_i32_0 = arith.constant 0 : i32
    return %arg0, %c0_i32 : i32, i32
  }
}

</mosaic_0001>

<bundles_post_ra>
// kernel: policy_network_forward.1
= control target key start
LH: loop header
LB: loop body
LE: loop exit
PB: predicated region body
PF: predicated region fallthrough
CT: control target
= control target key end

     0   :  { %s5753_s0 = inlined_call_operand.hbm [shape: f32[24,32], index: 0, kind: input, shape index: {}]   ;;  %s5754_s1 = inlined_call_operand.hbm [shape: bf16[32,512], index: 1, kind: input, shape index: {}]   ;;  %s5755_s2 = inlined_call_operand.hbm [shape: f32[1,512], index: 2, kind: input, shape index: {}]   ;;  %s5756_s3 = inlined_call_operand.vmem [shape: f32[1,512], index: 3, kind: input, shape index: {}]   ;;  %s5757_s4 = inlined_call_operand.hbm [shape: f32[1,512], index: 4, kind: input, shape index: {}]   ;;  %s5758_s5 = inlined_call_operand.hbm [shape: bf16[512,256], index: 5, kind: input, shape index: {}]   ;;  %s5759_s6 = inlined_call_operand.hbm [shape: f32[1,256], index: 6, kind: input, shape index: {}]   ;;  %s5760_s7 = inlined_call_operand.vmem [shape: f32[1,256], index: 7, kind: input, shape index: {}]   ;;  %s5761_s8 = inlined_call_operand.hbm [shape: f32[1,256], index: 8, kind: input, shape index: {}]   ;;  %s5762_s9 = inlined_call_operand.hbm [shape: bf16[256,128], index: 9, kind: input, shape index: {}]   ;;  %s5763_s10 = inlined_call_operand.vmem [shape: f32[1,128], index: 10, kind: input, shape index: {}]   ;;  %s5764_s11 = inlined_call_operand.vmem [shape: f32[1,128], index: 11, kind: input, shape index: {}]   ;;  %s5765_s12 = inlined_call_operand.hbm [shape: f32[1,128], index: 12, kind: input, shape index: {}]   ;;  %s5766_s13 = inlined_call_operand.hbm [shape: bf16[128,128], index: 13, kind: input, shape index: {}]   ;;  %s5767_s14 = inlined_call_operand.hbm [shape: f32[1,128], index: 14, kind: input, shape index: {}]   ;;  %s5768_s15 = inlined_call_operand.hbm [shape: bf16[128,128], index: 15, kind: input, shape index: {}]   ;;  %s5769_s16 = inlined_call_operand.hbm [shape: f32[1,128], index: 16, kind: input, shape index: {}]   ;;  %s5770_s17 = inlined_call_operand.vmem [shape: f32[24,128], index: 17, kind: output, shape index: {}]  }
   0x1   :  { %5785 = sst [smem:[#allocation35_spill]] %s5753_s0 }
   0x2   :  { %5786 = sst [smem:[#allocation36_spill]] %s5754_s1 }
   0x3   :  { %5787 = sst [smem:[#allocation37_spill]] %s5756_s3 }
   0x4   :  { %5788 = sst [smem:[#allocation38_spill]] %s5757_s4 }
   0x5   :  { %5789 = sst [smem:[#allocation39_spill]] %s5760_s7 }
   0x6   :  { %5790 = sst [smem:[#allocation40_spill]] %s5763_s10 }
   0x7   :  { %5791 = sst [smem:[#allocation41_spill]] %s5764_s11 }
   0x8   :  { %5792 = sst [smem:[#allocation42_spill]] %s5770_s17 }
   0x9   :  { %22 = vsyncpa [#allocation3], 0 }
   0xa   :  { %24 = vsyncpa [#allocation3 + $0x1], 0 }
   0xb   :  { %25 = vsyncpa [#allocation5], 0 }
   0xc   :  { %26 = vsyncpa [#allocation8], 0 }
   0xd   :  { %27 = vsyncpa [#allocation11], 0 }
   0xe   :  { %28 = vsyncpa [#allocation14], 0 }
   0xf   :  { %29 = vsyncpa [#allocation17], 0 }
  0x10   :  { %30 = vsyncpa [#allocation20], 0  ;;  %s5347_s24 = smov 0   ;;  %s5349_s25 = smov 0  }
  0x11   :  { %s5351_s26 = smov 0   ;;  %s5353_s27 = smov 0  }
  0x12 LB: > { %s5366_s28 = sadd.s32 4294967295, %s5202_s27   ;;  %s5369_s29 = sadd.s32 1, %s5202_s27   ;;  %s5202_s27 = sphi %s5353_s27, %s5828_s27   ;;  %s5198_s26 = sphi %s5351_s26, %s5832_s26   ;;  %s5194_s25 = sphi %s5349_s25, %s5831_s25   ;;  %s5190_s24 = sphi %s5347_s24, %s5830_s24  }
  0x13   : > { %5793 = sst [smem:[#allocation30_spill]] %s5366_s28  ;;  %s40_s0 = ssub.s32 %s5202_s27, %s5369_s29 }
  0x14   : > { %5794 = sst [smem:[#allocation31_spill]] %s5369_s29  ;;  %s43_s30 = sadd.s32 1, %s5198_s26 }
  0x15   : > { %p41_p0 = scmp.eq.s32.totalorder %s40_s0, 0  ;;  %p50_p1 = scmp.ne.s32.totalorder %s5198_s26, %s5194_s25 }
  0x16   : > { %p51_p2 = scmp.eq.s32.totalorder %s5202_s27, 0  ;;  %p56_p3 = scmp.ne.s32.totalorder %s5194_s25, %s5190_s24 }
  0x17   : > { %s5379_s18 = scalar_select %p41_p0, %s5198_s26, %s43_s30  }
  0x18   : > { %p5381_p4 = por %p51_p2, %p50_p1  ;;  %p5784_p5 = scmp.eq.s32.totalorder %s5366_s28, 0 }
  0x19   : > { %5795 = sst [smem:[#allocation32_spill]] %s5379_s18  ;;  %p416_p6 = scmp.eq.s32.totalorder %s5366_s28, 1 }
  0x1a   : > { %p3352_p7 = scmp.ge.s32.totalorder %s5202_s27, 1  ;;  %p5390_p8 = por %p5784_p5, %p56_p3 }
  0x1b   : > { %p429_p9 = scmp.lt.s32.totalorder %s5202_s27, 3  ;;  %p5395_p10 = por %p416_p6, %p50_p1 }
  0x1c   : > { %s5797_s1 = scalar_select %p5390_p8, 1, 0 }
  0x1d   : > { %s5799_s20 = scalar_select %p5395_p10, 1, 0 }
  0x1e   : > { %5798 = sst [smem:[#allocation33_spill]] %s5797_s1  ;;  %p5399_p11 = pnand %p3352_p7, %p429_p9 }
  0x1f   : > { %5800 = sst [smem:[#allocation34_spill]] %s5799_s20  ;;  %s5236_s30 = smov [#allocation4]  }
  0x20   : > { %s5802_s24 = sld [smem:[#allocation36_spill]]  ;;  %p4506_p12 = pneg %p5399_p11 }
  0x21   : > { %s442_s18 = sshll.u32 %s5236_s30, 4  ;;  %s5804_s4 = sld [smem:[#allocation38_spill]]  ;;  %s443_s18 = int_to_ptr.vmem [resolvable:$true] %s442_s18 }
  0x22   : > { %p5410_p13 = pnand %p4506_p12, %p5784_p5  ;;  %s5237_s22 = smov 256  }
  0x23   : > { %s5238_s23 = smov 16   ;;  %s496_s3 = sshll.u32 %s5759_s6, 4  ;;  %s497_s3 = int_to_ptr.hbm [resolvable:$true] %s496_s3 }
  0x24   : > { %s5240_s28 = smov [#allocation10]   ;;  %s5242_s7 = smov 64  }
  0x25   : > { %s498_s1 = sshll.u32 %s5240_s28, 4  ;;  %s5243_s10 = smov 4   ;;  %s499_s1 = int_to_ptr.vmem [resolvable:$true] %s498_s1 }
  0x26   : > { %s440_s0 = sshll.u32 %s5802_s24, 4  ;;  %s5239_s24 = smov [#allocation7]   ;;  %s441_s0 = int_to_ptr.hbm [resolvable:$true] %s440_s0 }
  0x27   : > { %s470_s11 = sshll.u32 %s5804_s4, 4  ;;  %s472_s30 = sshll.u32 %s5239_s24, 4  ;;  %s471_s11 = int_to_ptr.hbm [resolvable:$true] %s470_s11  ;;  %s473_s30 = int_to_ptr.vmem [resolvable:$true] %s472_s30 }
  0x28   : > { %4509 = dma.hbm_to_vmem [thread:$0]  (!%p5410_p13), %s441_s0, 1024, %s443_s18, [#allocation5], %s5237_s22, %s5237_s22, %s5238_s23  }
  0x29   : > { %4515 = dma.hbm_to_vmem [thread:$0]  (!%p5410_p13), %s471_s11, 64, %s473_s30, [#allocation8]  }
  0x2a   : > { %s522_s4 = sshll.u32 %s5762_s9, 4  ;;  %s5241_s18 = smov [#allocation13]   ;;  %s523_s4 = int_to_ptr.hbm [resolvable:$true] %s522_s4 }
  0x2b   : > { %4521 = dma.hbm_to_vmem [thread:$0]  (!%p5410_p13), %s497_s3, 32, %s499_s1, [#allocation11]  }
  0x2c   : > { %s524_s0 = sshll.u32 %s5241_s18, 4  ;;  %s554_s23 = sshll.u32 %s5766_s13, 4  ;;  %s525_s0 = int_to_ptr.vmem [resolvable:$true] %s524_s0  ;;  %s555_s23 = int_to_ptr.hbm [resolvable:$true] %s554_s23 }
  0x2d   : > { %4527 = dma.hbm_to_vmem [thread:$0]  (!%p5410_p13), %s523_s4, 2048, %s525_s0, [#allocation14], %s5242_s7, %s5242_s7, %s5243_s10  }
  0x2e   : > { %s5244_s24 = smov [#allocation16]   ;;  %s580_s3 = sshll.u32 %s5768_s15, 4  ;;  %s581_s3 = int_to_ptr.hbm [resolvable:$true] %s580_s3 }
  0x2f   : > { %s556_s28 = sshll.u32 %s5244_s24, 4  ;;  %s5245_s1 = smov [#allocation19]   ;;  %s557_s28 = int_to_ptr.vmem [resolvable:$true] %s556_s28 }
  0x30   : > { %4533 = dma.hbm_to_vmem [thread:$0]  (!%p5410_p13), %s555_s23, 1024, %s557_s28, [#allocation17], %s5242_s7, %s5242_s7, %s5243_s10  }
  0x31   : > { %s582_s20 = sshll.u32 %s5245_s1, 4  ;;  %s455_s0 = sshll.u32 %s5755_s2, 4  ;;  %s583_s20 = int_to_ptr.vmem [resolvable:$true] %s582_s20  ;;  %s456_s0 = int_to_ptr.hbm [resolvable:$true] %s455_s0 }
  0x32   : > { %4539 = dma.hbm_to_vmem [thread:$0]  (!%p5410_p13), %s581_s3, 1024, %s583_s20, [#allocation20], %s5242_s7, %s5242_s7, %s5243_s10  }
  0x33   : > { %s481_s24 = sshll.u32 %s5758_s5, 4  ;;  %s5246_s30 = smov [#allocation6]   ;;  %s482_s24 = int_to_ptr.hbm [resolvable:$true] %s481_s24 }
  0x34   : > { %s457_s17 = sshll.u32 %s5246_s30, 4  ;;  %s5247_s23 = smov [#allocation9]   ;;  %s458_s17 = int_to_ptr.vmem [resolvable:$true] %s457_s17 }
  0x35   : > { %4512 = dma.hbm_to_vmem [thread:$0]  (!%p5410_p13), %s456_s0, 64, %s458_s17, [#allocation5]  }
  0x36   : > { %s483_s28 = sshll.u32 %s5247_s23, 4  ;;  %s5248_s1 = smov 128   ;;  %s484_s28 = int_to_ptr.vmem [resolvable:$true] %s483_s28 }
  0x37   : > { %s5249_s18 = smov 8   ;;  %s511_s3 = sshll.u32 %s5761_s8, 4  ;;  %s512_s3 = int_to_ptr.hbm [resolvable:$true] %s511_s3 }
  0x38   : > { %4518 = dma.hbm_to_vmem [thread:$0]  (!%p5410_p13), %s482_s24, 8192, %s484_s28, [#allocation8], %s5248_s1, %s5248_s1, %s5249_s18  }
  0x39   : > { %s5250_s20 = smov [#allocation12]   ;;  %s543_s0 = sshll.u32 %s5765_s12, 4  ;;  %s544_s0 = int_to_ptr.hbm [resolvable:$true] %s543_s0 }
  0x3a   : > { %s513_s4 = sshll.u32 %s5250_s20, 4  ;;  %s5251_s30 = smov [#allocation15]   ;;  %s514_s4 = int_to_ptr.vmem [resolvable:$true] %s513_s4 }
  0x3b   : > { %4524 = dma.hbm_to_vmem [thread:$0]  (!%p5410_p13), %s512_s3, 32, %s514_s4, [#allocation11]  }
  0x3c   : > { %s545_s17 = sshll.u32 %s5251_s30, 4  ;;  %s569_s28 = sshll.u32 %s5767_s14, 4  ;;  %s546_s17 = int_to_ptr.vmem [resolvable:$true] %s545_s17  ;;  %s570_s28 = int_to_ptr.hbm [resolvable:$true] %s569_s28 }
  0x3d   : > { %4530 = dma.hbm_to_vmem [thread:$0]  (!%p5410_p13), %s544_s0, 16, %s546_s17, [#allocation14]  }
  0x3e   : > { %s595_s7 = sshll.u32 %s5769_s16, 4  ;;  %s5252_s10 = smov [#allocation18]   ;;  %s596_s7 = int_to_ptr.hbm [resolvable:$true] %s595_s7 }
  0x3f   : > { %s571_s20 = sshll.u32 %s5252_s10, 4  ;;  %s5253_s3 = smov [#allocation21]   ;;  %s572_s20 = int_to_ptr.vmem [resolvable:$true] %s571_s20 }
  0x40   : > { %4536 = dma.hbm_to_vmem [thread:$0]  (!%p5410_p13), %s570_s28, 16, %s572_s20, [#allocation17]  }
  0x41   : > { %s597_s4 = sshll.u32 %s5253_s3, 4  ;;  %p3365_p0 = scmp.ge.s32.totalorder %s5202_s27, 2  ;;  %s598_s4 = int_to_ptr.vmem [resolvable:$true] %s597_s4 }
  0x42   : > { %4542 = dma.hbm_to_vmem [thread:$0]  (!%p5410_p13), %s596_s7, 16, %s598_s4, [#allocation20]  }
  0x43   : > { %604 = sbr.rel (%p3365_p0) target bundleno = 114 (0x72), region = 80 }
  0x48   : > { %607 = sbr.rel (!%p5381_p4) target bundleno = 114 (0x72), region = 84  ;;  %s608_s11 = sand.u32 (%p5381_p4), 1, %s5198_s26  }
  0x49   : > { %s3367_s22 = sshll.u32 (%p5381_p4), %s5202_s27, 1  ;;  %s3366_s0 = sshll.u32 (%p5381_p4), %s608_s11, 4 }
  0x4a   : > { %s614_s30 = ssub.s32 (%p5381_p4), 3, %s3367_s22  ;;  %s5479_s23 = scalar_lea.sflag (%p5381_p4), [#allocation3], %s608_s11 }
  0x4b   : > { %p615_p1 = scmp.lt.s32.totalorder (%p5381_p4), %s614_s30, 2  ;;  %s612_s28 = scalar_lea.vmem (%p5381_p4), [#allocation2], %s3366_s0 }
  0x4d   : > { %s5834_s30 = smov (!%p615_p1, %s614_s30), 2 }
  0x4e   : > { %s3368_s17 = sshll.u32 %s5834_s30, 3 }
  0x4f   : > { %s618_s24 = ssub.s32 16, %s3368_s17 }
  0x50   : > { %s619_s29 = sshll.u32 %s618_s24, 4 }
  0x51   : > { %620 = vsyncadd %s5479_s23, %s619_s29  ;;  %p5482_p2 = scmp.ne.s32.totalorder %s3368_s17, 0  ;;  %s4245_s1 = sshll.u32 %s5202_s27, 4 }
  0x52   : > { %s5806_s10 = sld [smem:[#allocation35_spill]]  ;;  %s5490_s3 = sshll.u32 %s612_s28, 4  ;;  %s628_s3 = int_to_ptr.vmem [resolvable:$true] %s5490_s3 }
  0x53   : > { %s3372_s11 = sshll.u32 %s5834_s30, 7 }
  0x54   : > { %s5075_s0 = sshrl.u32 %s3372_s11, 4 }
  0x58   : > { %s623_s20 = scalar_lea.hbm %s5806_s10, %s4245_s1  ;;  %s5084_s29 = scalar_lea.hbm %s5806_s10, 24 }
  0x59   : > { %s625_s4 = sshll.u32 %s623_s20, 4  ;;  %s5493_s4 = int_to_ptr.hbm [resolvable:$true] %s625_s4 }
  0x5a   : > { %s5073_s22 = sshra.s32 %s5493_s4, 4  ;;  %s5074_s22 = int_to_ptr.hbm [resolvable:$true] %s5073_s22 }
  0x5b   : > { %s5080_s17 = scalar_lea.hbm %s5074_s22, %s5075_s0  ;;  %p5085_p7 = scmp.lt.s32.totalorder %s5074_s22, %s5806_s10 }
  0x5c   : > { %p5081_p3 = scmp.ne.s32.totalorder %s5074_s22, %s5080_s17  ;;  %p5086_p9 = scmp.lt.s32.totalorder %s5084_s29, %s5080_s17 }
  0x5e   : > { %p5082_p4 = pnand %p5081_p3, %p5482_p2  ;;  %p5087_p12 = por %p5086_p9, %p5085_p7 }
  0x60   : > { %p5083_p6 = pneg %p5082_p4 }
  0x62   : > { %p5088_p13 = pnand %p5087_p12, %p5083_p6 }
  0x64   : > { %5091 = shalt.err (!%p5088_p13)
}
  0x65   : > { %s5092_s18 = sshra.s32 %s628_s3, 4  ;;  %s5254_s20 = smov [#allocation2]   ;;  %s5093_s18 = int_to_ptr.vmem [resolvable:$true] %s5092_s18 }
  0x66   : > { %s5099_s7 = scalar_lea.vmem %s5093_s18, %s5075_s0  ;;  %s5103_s27 = scalar_lea.vmem %s5254_s20, 32 }
  0x67   : > { %p5100_p0 = scmp.ne.s32.totalorder %s5093_s18, %s5099_s7  ;;  %p5105_p4 = scmp.lt.s32.totalorder %s5103_s27, %s5099_s7 }
  0x69   : > { %p5101_p1 = pnand %p5100_p0, %p5482_p2 }
  0x6b   : > { %p5102_p3 = pneg %p5101_p1 }
  0x6d   : > { %p5107_p5 = pnand %p5105_p4, %p5102_p3 }
  0x6f   : > { %5110 = shalt.err (!%p5107_p5)
}
  0x70   : > { %s5255_s22 = smov 128   ;;  %s5256_s17 = smov 8  }
  0x71   : > { %633 = dma.hbm_to_vmem [thread:$0]  (%p5482_p2), %s5493_s4, %s3372_s11, %s628_s3, %s5479_s23, %s5255_s22, %s5255_s22, %s5256_s17  }
  0x72 PF: > { %639 = sbr.rel (%p5399_p11) target bundleno = 2687 (0xa7f), region = 88  ;;  %s641_s24 = sand.u32 (!%p5399_p11), 1, %s5194_s25  }
  0x73   : > { %s5522_s29 = sshll.u32 (!%p5399_p11), %s641_s24, 4  ;;  %s642_s28 = scalar_lea.sflag (!%p5399_p11), [#allocation3], %s641_s24 }
  0x74   : > { %s645_s1 = scalar_lea.vmem (!%p5399_p11), [#allocation2], %s5522_s29 }
  0x77   : > { %5161 = dma.done.wait (%p5390_p8), %s642_s28, 256  }
  0x78   : > { %5163 = vsyncadd (%p5390_p8), %s642_s28, 4294967040  ;;  %s5808_s30 = sld [smem:[#allocation30_spill]] }
  0x7e   : > { %p5809_p5 = scmp.eq.s32.totalorder %s5808_s30, 0 }
  0x80   : > { %5165 = dma.done.wait (%p5809_p5), [#allocation5], 1088   ;;  %p5810_p2 = pmov %p5809_p5 }
  0x82   : > { %5167 = vsyncadd (%p5810_p2), [#allocation5], 4294966208  ;;  %p5811_p11 = pmov %p5810_p2 }
  0x83   : > { %p5812_p6 = pmov %p5810_p2 }
  0x84   : > { %5169 = dma.done.wait (%p5811_p11), [#allocation8], 8256  }
  0x85   : > { %5171 = vsyncadd (%p5812_p6), [#allocation8], 4294959040  ;;  %p5813_p7 = pmov %p5810_p2 }
  0x86   : > { %p5814_p9 = pmov %p5810_p2 }
  0x87   : > { %5173 = dma.done.wait (%p5813_p7), [#allocation11], 64  }
  0x88   : > { %5175 = vsyncadd (%p5814_p9), [#allocation11], 4294967232  ;;  %p5815_p8 = pmov %p5810_p2 }
  0x89   : > { %p5816_p12 = pmov %p5810_p2 }
  0x8a   : > { %5177 = dma.done.wait (%p5815_p8), [#allocation14], 2064  }
  0x8b   : > { %5179 = vsyncadd (%p5816_p12), [#allocation14], 4294965232  ;;  %p5817_p13 = pmov %p5810_p2 }
  0x8c   : > { %p5818_p0 = pmov %p5810_p2 }
  0x8d   : > { %5181 = dma.done.wait (%p5817_p13), [#allocation17], 1040  }
  0x8e   : > { %5183 = vsyncadd (%p5818_p0), [#allocation17], 4294966256  ;;  %p5819_p1 = pmov %p5818_p0 }
  0x8f   : > { %p5820_p3 = pmov %p5818_p0 }
  0x90   : > { %5185 = dma.done.wait (%p5819_p1), [#allocation20], 1040  }
  0x91   : > { %5187 = vsyncadd (%p5820_p3), [#allocation20], 4294966256  ;;  %v3406_v0 = vld [vmem:[#allocation4 + $0x20] sm:$0xf]  ;;  %v4252_v1 = vld [vmem:[#allocation4 + $0x2c] sm:$0xf0] }
  0x92   : > { %v4250_v2 = vld [vmem:[#allocation4 + $0x24] sm:$0xf]  ;;  %v3407_v3 = vor.u32 %v4252_v1, %v3406_v0  ;;  %v3408_v4 = vld [vmem:[#allocation4 + $0x30] sm:$0xf0]  ;;  %v3414_v5 = vld [vmem:[#allocation4 + $0x28] sm:$0xf] }
  0x93   : > { %v4253_v6 = vld [vmem:[#allocation4 + $0x34] sm:$0xf0]  ;;  %v3411_v7 = vor.u32 %v4250_v2, %v3408_v4  ;;  %v4251_v9 = vld [vmem:[#allocation4 + $0x2c] sm:$0xf]  ;;  %v3416_v10 = vld [vmem:[#allocation4 + $0x38] sm:$0xf0] }
  0x94   : > { %v3415_v8 = vor.u32 %v4253_v6, %v3414_v5  ;;  %v3390_v11 = vld [vmem:[#allocation4] sm:$0xf]  ;;  %837 = vmatpush.bf16.msra.mxu0 %v3407_v3  ;;  %v3419_v12 = vor.u32 %v4251_v9, %v3416_v10  ;;  %v4248_v13 = vld [vmem:[#allocation4 + $0xc] sm:$0xf0]  ;;  %v4246_v14 = vld [vmem:[#allocation4 + $0x4] sm:$0xf] }
  0x95   : > { %v3392_v15 = vld [vmem:[#allocation4 + $0x10] sm:$0xf0]  ;;  %850 = vmatpush.bf16.msra.mxu1 %v3411_v7  ;;  %v3391_v16 = vor.u32 %v4248_v13, %v3390_v11  ;;  %v3398_v18 = vld [vmem:[#allocation4 + $0x8] sm:$0xf]  ;;  %v4249_v19 = vld [vmem:[#allocation4 + $0x14] sm:$0xf0] }
  0x96   : > { %863 = vmatpush.bf16.msra.mxu2 %v3415_v8  ;;  %v3395_v17 = vor.u32 %v4246_v14, %v3392_v15  ;;  %v4247_v20 = vld [vmem:[#allocation4 + $0xc] sm:$0xf]  ;;  %876 = vmatpush.bf16.msra.mxu3 %v3419_v12  ;;  %v3399_v21 = vor.u32 %v4249_v19, %v3398_v18  ;;  %v3400_v22 = vld [vmem:[#allocation4 + $0x18] sm:$0xf0]  ;;  %v767_v23 = vld [vmem:[%s645_s1] sm:$0xff]  ;;  %vm827_vm0 = vcmask 261120  }
  0x97   : > { %v3403_v24 = vor.u32 %v4247_v20, %v3400_v22  ;;  %v768_v25 = vpack.c.bf16 %v767_v23, %v767_v23  ;;  %v777_v26 = vld [vmem:[#allocation6] sm:$0xf]  ;;  %v3482_v27 = vld [vmem:[#allocation9 + $0x70] sm:$0xf]  ;;  %v3474_v9 = vld [vmem:[#allocation9 + $0x60] sm:$0xf] }
  0x98   : > { %838 = vmatpush.bf16.msra.mxu0 %v3391_v16  ;;  %v4269_v28 = vld [vmem:[#allocation9 + $0x74] sm:$0xf0]  ;;  %v3546_v29 = vld [vmem:[#allocation9 + $0xf0] sm:$0xf]  ;;  %v779_v38 = vperm.slane %v777_v26, 0  ;;  %v780_v40 = vperm.slane %v777_v26, 1 }
  0x99   : > { %851 = vmatpush.bf16.msra.mxu1 %v3395_v17  ;;  %v3483_v30 = vor.u32 %v4269_v28, %v3482_v27  ;;  %v4285_v31 = vld [vmem:[#allocation9 + $0xf4] sm:$0xf0]  ;;  %v3610_v32 = vld [vmem:[#allocation9 + $0x170] sm:$0xf]  ;;  %v781_v47 = vperm.slane %v777_v26, 2  ;;  %v782_v48 = vperm.slane %v777_v26, 3 }
  0x9a   : > { %864 = vmatpush.bf16.msra.mxu2 %v3399_v21  ;;  %877 = vmatpush.bf16.msra.mxu3 %v3403_v24  ;;  %v4301_v33 = vld [vmem:[#allocation9 + $0x174] sm:$0xf0]  ;;  %v3547_v34 = vor.u32 %v4285_v31, %v3546_v29  ;;  %v3674_v36 = vld [vmem:[#allocation9 + $0x1f0] sm:$0xf]  ;;  %v4267_v10 = vld [vmem:[#allocation9 + $0x64] sm:$0xf0] }
  0x9b   : > { %3420 = vmatmul.msk.bf16.vlgmr.msra.gmra.mxu0 %vm827_vm0, %v768_v25  ;;  %v3611_v35 = vor.u32 %v4301_v33, %v3610_v32  ;;  %v4317_v37 = vld [vmem:[#allocation9 + $0x1f4] sm:$0xf0]  ;;  %v3538_v11 = vld [vmem:[#allocation9 + $0xe0] sm:$0xf]  ;;  %v3475_v12 = vor.u32 %v4267_v10, %v3474_v9  ;;  %v4283_v13 = vld [vmem:[#allocation9 + $0xe4] sm:$0xf0] }
  0x9c   : > { %3421 = vmatmul.msk.bf16.vlgmr.msra.gmra.mxu1 %vm827_vm0, %v768_v25  ;;  %1351 = vmatpush.bf16.msrb.mxu0 %v3483_v30  ;;  %v3675_v39 = vor.u32 %v4317_v37, %v3674_v36  ;;  %v3602_v14 = vld [vmem:[#allocation9 + $0x160] sm:$0xf]  ;;  %v4299_v15 = vld [vmem:[#allocation9 + $0x164] sm:$0xf0]  ;;  %v3539_v16 = vor.u32 %v4283_v13, %v3538_v11  ;;  %v3466_v20 = vld [vmem:[#allocation9 + $0x50] sm:$0xf] }
  0x9d   : > { %3422 = vmatmul.msk.bf16.vlgmr.msra.gmra.mxu2 %vm827_vm0, %v768_v25  ;;  %3423 = vmatmul.msk.bf16.vlgmr.msra.gmra.mxu3 %vm827_vm0, %v768_v25  ;;  %v3603_v17 = vor.u32 %v4299_v15, %v3602_v14  ;;  %v3666_v18 = vld [vmem:[#allocation9 + $0x1e0] sm:$0xf]  ;;  %v4315_v19 = vld [vmem:[#allocation9 + $0x1e4] sm:$0xf0]  ;;  %v4265_v22 = vld [vmem:[#allocation9 + $0x54] sm:$0xf0] }
  0x9e   : > { %1364 = vmatpush.bf16.msrb.mxu1 %v3547_v34  ;;  %1377 = vmatpush.bf16.msrb.mxu2 %v3611_v35  ;;  %v3667_v21 = vor.u32 %v4315_v19, %v3666_v18  ;;  %v3530_v23 = vld [vmem:[#allocation9 + $0xd0] sm:$0xf]  ;;  %v4281_v24 = vld [vmem:[#allocation9 + $0xd4] sm:$0xf0]  ;;  %v3467_v25 = vor.u32 %v4265_v22, %v3466_v20  ;;  %v3458_v33 = vld [vmem:[#allocation9 + $0x40] sm:$0xf] }
  0x9f   : > { %1390 = vmatpush.bf16.msrb.mxu3 %v3675_v39  ;;  %v3531_v26 = vor.u32 %v4281_v24, %v3530_v23  ;;  %v3594_v27 = vld [vmem:[#allocation9 + $0x150] sm:$0xf]  ;;  %v4297_v28 = vld [vmem:[#allocation9 + $0x154] sm:$0xf0]  ;;  %v4263_v34 = vld [vmem:[#allocation9 + $0x44] sm:$0xf0] }
  0xa0   : > { %1352 = vmatpush.bf16.msrb.mxu0 %v3475_v12  ;;  %v3658_v29 = vld [vmem:[#allocation9 + $0x1d0] sm:$0xf]  ;;  %v3595_v30 = vor.u32 %v4297_v28, %v3594_v27  ;;  %v4313_v31 = vld [vmem:[#allocation9 + $0x1d4] sm:$0xf0]  ;;  %v3522_v35 = vld [vmem:[#allocation9 + $0xc0] sm:$0xf]  ;;  %v3459_v36 = vor.u32 %v4263_v34, %v3458_v33 }
  0xa1   : > { %v3659_v32 = vor.u32 %v4313_v31, %v3658_v29  ;;  %v4279_v37 = vld [vmem:[#allocation9 + $0xc4] sm:$0xf0]  ;;  %v3434_v9 = vld [vmem:[#allocation9 + $0x10] sm:$0xf]  ;;  %v4257_v10 = vld [vmem:[#allocation9 + $0x14] sm:$0xf0] }
  0xa2   : > { %1365 = vmatpush.bf16.msrb.mxu1 %v3539_v16  ;;  %1378 = vmatpush.bf16.msrb.mxu2 %v3603_v17  ;;  %v4295_v39 = vld [vmem:[#allocation9 + $0x144] sm:$0xf0]  ;;  %v3498_v11 = vld [vmem:[#allocation9 + $0x90] sm:$0xf]  ;;  %v3435_v12 = vor.u32 %v4257_v10, %v3434_v9  ;;  %v4273_v13 = vld [vmem:[#allocation9 + $0x94] sm:$0xf0] }
  0xa3   : > { %1391 = vmatpush.bf16.msrb.mxu3 %v3667_v21  ;;  %v3562_v14 = vld [vmem:[#allocation9 + $0x110] sm:$0xf]  ;;  %v4289_v15 = vld [vmem:[#allocation9 + $0x114] sm:$0xf0]  ;;  %v3499_v16 = vor.u32 %v4273_v13, %v3498_v11  ;;  %v3426_v21 = vld [vmem:[#allocation9] sm:$0xf] }
  0xa4   : > { %1353 = vmatpush.bf16.msrb.mxu0 %v3467_v25  ;;  %v3563_v17 = vor.u32 %v4289_v15, %v3562_v14  ;;  %v3626_v18 = vld [vmem:[#allocation9 + $0x190] sm:$0xf]  ;;  %v4305_v19 = vld [vmem:[#allocation9 + $0x194] sm:$0xf0]  ;;  %v4255_v22 = vld [vmem:[#allocation9 + $0x4] sm:$0xf0] }
  0xa5   : > { %v3627_v20 = vor.u32 %v4305_v19, %v3626_v18  ;;  %v3490_v23 = vld [vmem:[#allocation9 + $0x80] sm:$0xf]  ;;  %v3427_v24 = vor.u32 %v4255_v22, %v3426_v21  ;;  %v4271_v25 = vld [vmem:[#allocation9 + $0x84] sm:$0xf0]  ;;  %v3484_v34 = vld [vmem:[#allocation9 + $0x78] sm:$0xf0] }
  0xa6   : > { %1366 = vmatpush.bf16.msrb.mxu1 %v3531_v26  ;;  %1379 = vmatpush.bf16.msrb.mxu2 %v3595_v30  ;;  %v3554_v26 = vld [vmem:[#allocation9 + $0x100] sm:$0xf]  ;;  %v4287_v27 = vld [vmem:[#allocation9 + $0x104] sm:$0xf0]  ;;  %v3491_v28 = vor.u32 %v4271_v25, %v3490_v23  ;;  %v3660_v9 = vld [vmem:[#allocation9 + $0x1d8] sm:$0xf0] }
  0xa7   : > { %1392 = vmatpush.bf16.msrb.mxu3 %v3659_v32  ;;  %v3555_v29 = vor.u32 %v4287_v27, %v3554_v26  ;;  %v3618_v30 = vld [vmem:[#allocation9 + $0x180] sm:$0xf]  ;;  %v4303_v31 = vld [vmem:[#allocation9 + $0x184] sm:$0xf0]  ;;  %v4268_v32 = vld [vmem:[#allocation9 + $0x74] sm:$0xf] }
  0xa8   : > { %1354 = vmatpush.bf16.msrb.mxu0 %v3459_v36  ;;  %v3619_v33 = vor.u32 %v4303_v31, %v3618_v30  ;;  %v3548_v36 = vld [vmem:[#allocation9 + $0xf8] sm:$0xf0]  ;;  %v4262_v10 = vld [vmem:[#allocation9 + $0x44] sm:$0xf]  ;;  %v3524_v14 = vld [vmem:[#allocation9 + $0xc8] sm:$0xf0] }
  0xa9   : > { %v4278_v13 = vld [vmem:[#allocation9 + $0xc4] sm:$0xf]  ;;  %v4260_v27 = vld [vmem:[#allocation9 + $0x34] sm:$0xf]  ;;  %v3516_v31 = vld [vmem:[#allocation9 + $0xb8] sm:$0xf0] }
  0xaa   : > { %v4294_v15 = vld [vmem:[#allocation9 + $0x144] sm:$0xf]  ;;  %v3527_v19 = vor.u32 %v4278_v13, %v3524_v14  ;;  %v3620_v13 = vld [vmem:[#allocation9 + $0x188] sm:$0xf0]  ;;  %s5821_s19 = sld [smem:[#allocation37_spill]]  ;;  %s5705_s4 = scalar_lea.vmem [#allocation22], %s5522_s29  }
  0xab   : > { %s5822_s11 = sld [smem:[#allocation39_spill]] }
  0xac   : > { %s5823_s20 = sld [smem:[#allocation40_spill]] }
  0xad   : > { %s5824_s17 = sld [smem:[#allocation41_spill]] }
  0xae   : > { %s5826_s18 = sld [smem:[#allocation30_spill]] (%p5395_p10) }
  0xaf   : > { %s5827_s28 = sld [smem:[#allocation42_spill]] (%p5395_p10) }
  0xb4   : > { %s4229_s7 = sshll.u32 (%p5395_p10), %s5826_s18, 1  ;;  %s4454_s27 = sshll.u32 (%p5395_p10), %s5826_s18, 4 }
  0xb5   : > { %s3014_s22 = ssub.s32 (%p5395_p10), 3, %s4229_s7 }
  0xb6   : > { %p3015_p4 = scmp.lt.s32.totalorder (%p5395_p10), %s3014_s22, 2 }
 0x118   : > { %v840_v41 = vpop.f32.mrf.mxu0 }
 0x119   : > { %v841_v42 = vadd.f32 %v840_v41, %v779_v38  ;;  %v853_v43 = vpop.f32.mrf.mxu1  ;;  %v3586_v38 = vld [vmem:[#allocation9 + $0x140] sm:$0xf] }
 0x11a   : > { %v854_v44 = vadd.f32 %v853_v43, %v780_v40  ;;  %v3523_v40 = vor.u32 %v4279_v37, %v3522_v35  ;;  %v3587_v41 = vor.u32 %v4295_v39, %v3586_v38  ;;  %v4311_v43 = vld [vmem:[#allocation9 + $0x1c4] sm:$0xf0]  ;;  %v4284_v35 = vld [vmem:[#allocation9 + $0xf4] sm:$0xf]  ;;  %v3487_v37 = vor.u32 %v4268_v32, %v3484_v34 }
 0x11b   : > { %v883_v45 = vmul.f32 0.01, %v841_v42  ;;  %v3551_v38 = vor.u32 %v4284_v35, %v3548_v36  ;;  %v4300_v39 = vld [vmem:[#allocation9 + $0x174] sm:$0xf] }
 0x11c   : > { %v884_v46 = vmul.f32 0.01, %v854_v44  ;;  %1367 = vmatpush.bf16.msrb.mxu1 %v3523_v40  ;;  %1380 = vmatpush.bf16.msrb.mxu2 %v3587_v41  ;;  %v3612_v40 = vld [vmem:[#allocation9 + $0x178] sm:$0xf0]  ;;  %v4316_v41 = vld [vmem:[#allocation9 + $0x1f4] sm:$0xf] }
 0x11d   : > { %v5559_v50 = vmax.f32 %v841_v42, %v883_v45  ;;  %v3650_v42 = vld [vmem:[#allocation9 + $0x1c0] sm:$0xf]  ;;  %v3450_v45 = vld [vmem:[#allocation9 + $0x30] sm:$0xf]  ;;  %v4292_v32 = vld [vmem:[#allocation9 + $0x134] sm:$0xf] }
 0x11e   : > { %v5561_v51 = vmax.f32 %v854_v44, %v884_v46  ;;  %v3651_v44 = vor.u32 %v4311_v43, %v3650_v42  ;;  %v4261_v46 = vld [vmem:[#allocation9 + $0x34] sm:$0xf0]  ;;  %v3615_v42 = vor.u32 %v4300_v39, %v3612_v40  ;;  %v3676_v43 = vld [vmem:[#allocation9 + $0x1f8] sm:$0xf0]  ;;  %v4258_v40 = vld [vmem:[#allocation9 + $0x24] sm:$0xf] }
 0x11f   : > { %v898_v61 = vmul.f32 %v5559_v50, %v5559_v50 }
 0x120   : > { %v866_v49 = vpop.f32.mrf.mxu2  ;;  %v879_v53 = vpop.f32.mrf.mxu3  ;;  %v893_v60 = vadd.f32 %v5561_v51, %v5559_v50  ;;  %v899_v62 = vmul.f32 %v5561_v51, %v5561_v51  ;;  %1393 = vmatpush.bf16.msrb.mxu3 %v3651_v44  ;;  %v4266_v44 = vld [vmem:[#allocation9 + $0x64] sm:$0xf] }
 0x121   : > { %v867_v52 = vadd.f32 %v866_v49, %v781_v47  ;;  %v842_v54 = vpop.f32.mrf.mxu0  ;;  %v880_v55 = vadd.f32 %v879_v53, %v782_v48  ;;  %v855_v56 = vpop.f32.mrf.mxu1  ;;  %v3514_v47 = vld [vmem:[#allocation9 + $0xb0] sm:$0xf]  ;;  %v3451_v48 = vor.u32 %v4261_v46, %v3450_v45  ;;  %v4277_v49 = vld [vmem:[#allocation9 + $0xb4] sm:$0xf0]  ;;  %v3476_v45 = vld [vmem:[#allocation9 + $0x68] sm:$0xf0]  ;;  %v3679_v46 = vor.u32 %v4316_v41, %v3676_v43 }
 0x122   : > { %v902_v5 = vadd.f32 %v899_v62, %v898_v61  ;;  %v4293_v53 = vld [vmem:[#allocation9 + $0x134] sm:$0xf0]  ;;  %v3515_v54 = vor.u32 %v4277_v49, %v3514_v47  ;;  %v3642_v56 = vld [vmem:[#allocation9 + $0x1b0] sm:$0xf]  ;;  %v4259_v61 = vld [vmem:[#allocation9 + $0x24] sm:$0xf0]  ;;  %v3479_v47 = vor.u32 %v4266_v44, %v3476_v45 }
 0x123   : > { %v885_v57 = vmul.f32 0.01, %v867_v52  ;;  %v886_v58 = vmul.f32 0.01, %v880_v55  ;;  %1355 = vmatpush.bf16.msrb.mxu0 %v3451_v48  ;;  %v3506_v62 = vld [vmem:[#allocation9 + $0xa0] sm:$0xf] }
 0x124   : > { %1368 = vmatpush.bf16.msrb.mxu1 %v3515_v54  ;;  %v4282_v48 = vld [vmem:[#allocation9 + $0xe4] sm:$0xf]  ;;  %v3540_v49 = vld [vmem:[#allocation9 + $0xe8] sm:$0xf0] }
 0x125   : > { %v5563_v59 = vmax.f32 %v867_v52, %v885_v57  ;;  %v5571_v63 = vmax.f32 %v880_v55, %v886_v58  ;;  %v3578_v52 = vld [vmem:[#allocation9 + $0x130] sm:$0xf]  ;;  %v4309_v57 = vld [vmem:[#allocation9 + $0x1b4] sm:$0xf0]  ;;  %v3543_v54 = vor.u32 %v4282_v48, %v3540_v49  ;;  %v3444_v41 = vld [vmem:[#allocation9 + $0x28] sm:$0xf0] }
 0x126   : > { %v3579_v55 = vor.u32 %v4293_v53, %v3578_v52  ;;  %v3643_v58 = vor.u32 %v4309_v57, %v3642_v56  ;;  %v4298_v52 = vld [vmem:[#allocation9 + $0x164] sm:$0xf]  ;;  %v3668_v57 = vld [vmem:[#allocation9 + $0x1e8] sm:$0xf0]  ;;  %v3447_v44 = vor.u32 %v4258_v40, %v3444_v41 }
 0x127   : > { %v894_v0 = vadd.f32 %v893_v60, %v5563_v59  ;;  %v900_v4 = vmul.f32 %v5563_v59, %v5563_v59  ;;  %v901_v7 = vmul.f32 %v5571_v63, %v5571_v63  ;;  %v3442_v60 = vld [vmem:[#allocation9 + $0x20] sm:$0xf]  ;;  %v4314_v56 = vld [vmem:[#allocation9 + $0x1e4] sm:$0xf]  ;;  %v3508_v45 = vld [vmem:[#allocation9 + $0xa8] sm:$0xf0] }
 0x128   : > { %v868_v1 = vpop.f32.mrf.mxu2  ;;  %v881_v2 = vpop.f32.mrf.mxu3  ;;  %1381 = vmatpush.bf16.msrb.mxu2 %v3579_v55  ;;  %1394 = vmatpush.bf16.msrb.mxu3 %v3643_v58  ;;  %v3604_v55 = vld [vmem:[#allocation9 + $0x168] sm:$0xf0]  ;;  %v4306_v49 = vld [vmem:[#allocation9 + $0x1a4] sm:$0xf] }
 0x129   : > { %v895_v3 = vadd.f32 %v894_v0, %v5571_v63  ;;  %v903_v6 = vadd.f32 %v902_v5, %v900_v4  ;;  %v3443_v0 = vor.u32 %v4259_v61, %v3442_v60  ;;  %v4275_v1 = vld [vmem:[#allocation9 + $0xa4] sm:$0xf0]  ;;  %v3570_v2 = vld [vmem:[#allocation9 + $0x120] sm:$0xf]  ;;  %v3607_v60 = vor.u32 %v4298_v52, %v3604_v55  ;;  %v3572_v48 = vld [vmem:[#allocation9 + $0x128] sm:$0xf0] }
 0x12a   : > { %v3507_v4 = vor.u32 %v4275_v1, %v3506_v62  ;;  %v3671_v61 = vor.u32 %v4314_v56, %v3668_v57  ;;  %v4264_v62 = vld [vmem:[#allocation9 + $0x54] sm:$0xf]  ;;  %v3636_v52 = vld [vmem:[#allocation9 + $0x1a8] sm:$0xf0]  ;;  %v3436_v56 = vld [vmem:[#allocation9 + $0x18] sm:$0xf0] }
 0x12b   : > { %896 = vadd.xlane.f32.xlu0 %v895_v3  ;;  %v904_v8 = vadd.f32 %v903_v6, %v901_v7  ;;  %v4291_v3 = vld [vmem:[#allocation9 + $0x124] sm:$0xf0]  ;;  %v3634_v6 = vld [vmem:[#allocation9 + $0x1a0] sm:$0xf]  ;;  %1356 = vmatpush.bf16.msrb.mxu0 %v3443_v0  ;;  %v3468_v0 = vld [vmem:[#allocation9 + $0x58] sm:$0xf0] }
 0x12c   : > { %v3571_v5 = vor.u32 %v4291_v3, %v3570_v2  ;;  %v4307_v7 = vld [vmem:[#allocation9 + $0x1a4] sm:$0xf0]  ;;  %1369 = vmatpush.bf16.msrb.mxu1 %v3507_v4  ;;  %v4280_v1 = vld [vmem:[#allocation9 + $0xd4] sm:$0xf]  ;;  %v3471_v2 = vor.u32 %v4264_v62, %v3468_v0  ;;  %v3532_v3 = vld [vmem:[#allocation9 + $0xd8] sm:$0xf0] }
 0x12d   : > { %v4296_v4 = vld [vmem:[#allocation9 + $0x154] sm:$0xf]  ;;  %v3564_v62 = vld [vmem:[#allocation9 + $0x118] sm:$0xf0] }
 0x12e   : > { %1382 = vmatpush.bf16.msrb.mxu2 %v3571_v5  ;;  %v3596_v5 = vld [vmem:[#allocation9 + $0x158] sm:$0xf0]  ;;  %v4256_v55 = vld [vmem:[#allocation9 + $0x14] sm:$0xf] }
 0x12f   : > { %1357 = vmatpush.bf16.msrb.mxu0 %v3435_v12  ;;  %v3460_v12 = vld [vmem:[#allocation9 + $0x48] sm:$0xf0]  ;;  %v4272_v57 = vld [vmem:[#allocation9 + $0x94] sm:$0xf]  ;;  %v3439_v0 = vor.u32 %v4256_v55, %v3436_v56 }
 0x130   : > { %1370 = vmatpush.bf16.msrb.mxu1 %v3499_v16  ;;  %v3588_v16 = vld [vmem:[#allocation9 + $0x148] sm:$0xf0]  ;;  %v3463_v18 = vor.u32 %v4262_v10, %v3460_v12  ;;  %v4286_v10 = vld [vmem:[#allocation9 + $0x104] sm:$0xf] }
 0x131   : > { %v3591_v22 = vor.u32 %v4294_v15, %v3588_v16  ;;  %v4302_v12 = vld [vmem:[#allocation9 + $0x184] sm:$0xf] }
 0x132   : > { %1383 = vmatpush.bf16.msrb.mxu2 %v3563_v17  ;;  %v4310_v17 = vld [vmem:[#allocation9 + $0x1c4] sm:$0xf] }
 0x133   : > { %905 = vadd.xlane.f32.xlu0 %v904_v8  ;;  %v3635_v8 = vor.u32 %v4307_v7, %v3634_v6  ;;  %1358 = vmatpush.bf16.msrb.mxu0 %v3427_v24  ;;  %v3535_v6 = vor.u32 %v4280_v1, %v3532_v3  ;;  %v3599_v7 = vor.u32 %v4296_v4, %v3596_v5  ;;  %v3628_v3 = vld [vmem:[#allocation9 + $0x198] sm:$0xf0]  ;;  %v4254_v4 = vld [vmem:[#allocation9 + $0x4] sm:$0xf] }
 0x134   : > { %1371 = vmatpush.bf16.msrb.mxu1 %v3491_v28  ;;  %v3452_v28 = vld [vmem:[#allocation9 + $0x38] sm:$0xf0] }
 0x135   : > { %1395 = vmatpush.bf16.msrb.mxu3 %v3635_v8  ;;  %v4312_v8 = vld [vmem:[#allocation9 + $0x1d4] sm:$0xf]  ;;  %v3455_v30 = vor.u32 %v4260_v27, %v3452_v28 }
 0x136   : > { %1384 = vmatpush.bf16.msrb.mxu2 %v3555_v29  ;;  %v3663_v11 = vor.u32 %v4312_v8, %v3660_v9  ;;  %v4276_v29 = vld [vmem:[#allocation9 + $0xb4] sm:$0xf]  ;;  %v3492_v8 = vld [vmem:[#allocation9 + $0x88] sm:$0xf0] }
 0x137   : > { %1403 = vmatpush.bf16.msra.mxu0 %v3487_v37  ;;  %v3519_v35 = vor.u32 %v4276_v29, %v3516_v31  ;;  %v4308_v37 = vld [vmem:[#allocation9 + $0x1b4] sm:$0xf] }
 0x138   : > { %1416 = vmatpush.bf16.msra.mxu1 %v3551_v38  ;;  %v3644_v38 = vld [vmem:[#allocation9 + $0x1b8] sm:$0xf0] }
 0x139   : > { %1396 = vmatpush.bf16.msrb.mxu3 %v3627_v20  ;;  %v3652_v20 = vld [vmem:[#allocation9 + $0x1c8] sm:$0xf0]  ;;  %v3647_v39 = vor.u32 %v4308_v37, %v3644_v38 }
 0x13a   : > { %1429 = vmatpush.bf16.msra.mxu2 %v3615_v42  ;;  %v3655_v25 = vor.u32 %v4310_v17, %v3652_v20  ;;  %v4274_v42 = vld [vmem:[#allocation9 + $0xa4] sm:$0xf] }
 0x13b   : > { %1404 = vmatpush.bf16.msra.mxu0 %v3479_v47  ;;  %v3511_v47 = vor.u32 %v4274_v42, %v3508_v45 }
 0x13c   : > { %1417 = vmatpush.bf16.msra.mxu1 %v3543_v54  ;;  %v3639_v54 = vor.u32 %v4306_v49, %v3636_v52 }
 0x13d   : > { %1397 = vmatpush.bf16.msrb.mxu3 %v3619_v33  ;;  %v3580_v33 = vld [vmem:[#allocation9 + $0x138] sm:$0xf0] }
 0x13e   : > { %1430 = vmatpush.bf16.msra.mxu2 %v3607_v60  ;;  %v3583_v36 = vor.u32 %v4292_v32, %v3580_v33  ;;  %v3500_v60 = vld [vmem:[#allocation9 + $0x98] sm:$0xf0] }
 0x13f   : > { %1405 = vmatpush.bf16.msra.mxu0 %v3471_v2  ;;  %v3503_v1 = vor.u32 %v4272_v57, %v3500_v60  ;;  %v4304_v2 = vld [vmem:[#allocation9 + $0x194] sm:$0xf] }
 0x140   : > { %1418 = vmatpush.bf16.msra.mxu1 %v3535_v6  ;;  %v3428_v6 = vld [vmem:[#allocation9 + $0x8] sm:$0xf0]  ;;  %v3631_v9 = vor.u32 %v4304_v2, %v3628_v3 }
 0x141   : > { %1442 = vmatpush.bf16.msra.mxu3 %v3679_v46  ;;  %v4290_v46 = vld [vmem:[#allocation9 + $0x124] sm:$0xf]  ;;  %v3431_v15 = vor.u32 %v4254_v4, %v3428_v6 }
 0x142   : > { %1431 = vmatpush.bf16.msra.mxu2 %v3599_v7  ;;  %v4270_v7 = vld [vmem:[#allocation9 + $0x84] sm:$0xf] }
 0x143   : > { %1406 = vmatpush.bf16.msra.mxu0 %v3463_v18  ;;  %v3495_v16 = vor.u32 %v4270_v7, %v3492_v8 }
 0x144   : > { %1419 = vmatpush.bf16.msra.mxu1 %v3527_v19  ;;  %v3623_v19 = vor.u32 %v4302_v12, %v3620_v13 }
 0x145   : > { %1443 = vmatpush.bf16.msra.mxu3 %v3671_v61  ;;  %v4288_v61 = vld [vmem:[#allocation9 + $0x114] sm:$0xf] }
 0x146   : > { %1432 = vmatpush.bf16.msra.mxu2 %v3591_v22  ;;  %v3567_v5 = vor.u32 %v4288_v61, %v3564_v62  ;;  %v891_v22 = vld [vmem:[%s5821_s19] sm:$0xf] }
 0x147   : > { %1407 = vmatpush.bf16.msra.mxu0 %v3455_v30  ;;  %v932_v29 = vperm.slane %v891_v22, 0  ;;  %v933_v32 = vperm.slane %v891_v22, 1  ;;  %v934_v33 = vperm.slane %v891_v22, 2 }
 0x148   : > { %1420 = vmatpush.bf16.msra.mxu1 %v3519_v35 }
 0x149   : > { %1444 = vmatpush.bf16.msra.mxu3 %v3663_v11  ;;  %v3556_v11 = vld [vmem:[#allocation9 + $0x108] sm:$0xf0] }
 0x14a   : > { %1433 = vmatpush.bf16.msra.mxu2 %v3583_v36  ;;  %v3559_v18 = vor.u32 %v4286_v10, %v3556_v11 }
 0x14b   : > { %1408 = vmatpush.bf16.msra.mxu0 %v3447_v44 }
 0x14c   : > { %1421 = vmatpush.bf16.msra.mxu1 %v3511_v47 }
 0x14d   : > { %1445 = vmatpush.bf16.msra.mxu3 %v3655_v25 }
 0x14f   : > { %1409 = vmatpush.bf16.msra.mxu0 %v3439_v0 }
 0x150   : > { %1422 = vmatpush.bf16.msra.mxu1 %v3503_v1 }
 0x151   : > { %1446 = vmatpush.bf16.msra.mxu3 %v3647_v39 }
 0x153   : > { %1410 = vmatpush.bf16.msra.mxu0 %v3431_v15 }
 0x154   : > { %1423 = vmatpush.bf16.msra.mxu1 %v3495_v16 }
 0x155   : > { %1447 = vmatpush.bf16.msra.mxu3 %v3639_v54  ;;  %v1025_v54 = vld [vmem:[#allocation10] sm:$0x3] }
 0x156   : > { %v1027_v57 = vperm.slane %v1025_v54, 0  ;;  %v1028_v0 = vperm.slane %v1025_v54, 1  ;;  %v1460_v54 = vld [vmem:[#allocation12] sm:$0x3] }
 0x159   : > { %1448 = vmatpush.bf16.msra.mxu3 %v3631_v9 }
 0x15d   : > { %1449 = vmatpush.bf16.msra.mxu3 %v3623_v19 }
 0x19e   : > { %v897_v53 = vpop.xlane.xlu0 %896 }
 0x19f   : > { %v5579_v58 = vmul.f32 0.001953125, %v897_v53  ;;  %v3575_v53 = vor.u32 %v4290_v46, %v3572_v48 }
 0x1a1   : > { %v909_v23 = vmul.f32 %v5579_v58, %v5579_v58  ;;  %1434 = vmatpush.bf16.msra.mxu2 %v3575_v53  ;;  %v912_v25 = vsub.f32 %v5559_v50, %v5579_v58  ;;  %v914_v27 = vsub.f32 %v5563_v59, %v5579_v58  ;;  %v915_v30 = vsub.f32 %v5571_v63, %v5579_v58 }
 0x1a5   : > { %1435 = vmatpush.bf16.msra.mxu2 %v3567_v5 }
 0x1a6   : > { %v906_v21 = vpop.xlane.xlu0 %905 }
 0x1a7   : > { %v908_v24 = vmul.f32 0.001953125, %v906_v21 }
 0x1a9   : > { %v910_v26 = vsub.f32 %v908_v24, %v909_v23  ;;  %1436 = vmatpush.bf16.msra.mxu2 %v3559_v18  ;;  %v892_v24 = vld [vmem:[#allocation7] sm:$0xf] }
 0x1aa   : > { %v945_v31 = vperm.slane %v892_v24, 0  ;;  %v946_v50 = vperm.slane %v892_v24, 1  ;;  %v947_v36 = vperm.slane %v892_v24, 2  ;;  %v948_v37 = vperm.slane %v892_v24, 3 }
 0x1ab   : > { %v911_v34 = vmax.f32 %v910_v26, 0.0  ;;  %v913_v26 = vsub.f32 %v5561_v51, %v5579_v58 }
 0x1ad   : > { %v5583_v43 = vadd.f32 1e-05, %v911_v34  ;;  %v935_v34 = vperm.slane %v891_v22, 3 }
 0x1af   : > { %4693 = vrsqrt.f32 %v5583_v43  ;;  %vm923_vm2 = vweird.f32 %v5583_v43 }
 0x1b5   : > { %v4694_v14 = vpop.eup %4693 }
 0x1b6   : > { %v918_v17 = vmul.f32 %v4694_v14, %v5583_v43  ;;  %vm924_vm1 = vweird.f32 %v4694_v14 }
 0x1b7   : > { %vm925_vm3 = vmor %vm923_vm2, %vm924_vm1 }
 0x1b8   : > { %v919_v20 = vmul.f32 %v4694_v14, %v918_v17 }
 0x1ba   : > { %v920_v21 = vmul.f32 0.5, %v919_v20 }
 0x1bc   : > { %v921_v23 = vsub.f32 1.5, %v920_v21 }
 0x1be   : > { %v922_v28 = vmul.f32 %v4694_v14, %v921_v23 }
 0x1c0   : > { %v926_v35 = vsel %vm925_vm3, %v4694_v14, %v922_v28  ;;  %v4324_v28 = vld [vmem:[#allocation13 + $0x30] sm:$0xff] }
 0x1c1   : > { %v927_v51 = vmul.f32 %v926_v35, %v912_v25  ;;  %v928_v38 = vmul.f32 %v926_v35, %v913_v26  ;;  %v929_v39 = vmul.f32 %v926_v35, %v914_v27  ;;  %v930_v59 = vmul.f32 %v926_v35, %v915_v30  ;;  %v4325_v26 = vld [vmem:[#allocation13 + $0x38] sm:$0xff]  ;;  %v4323_v30 = vld [vmem:[#allocation13 + $0x28] sm:$0xff] }
 0x1c2   : > { %v4333_v27 = vld [vmem:[#allocation13 + $0x78] sm:$0xff] }
 0x1c3   : > { %v940_v40 = vmul.f32 %v932_v29, %v927_v51  ;;  %v941_v41 = vmul.f32 %v933_v32, %v928_v38  ;;  %v942_v42 = vmul.f32 %v934_v33, %v929_v39  ;;  %v943_v43 = vmul.f32 %v935_v34, %v930_v59  ;;  %v4332_v29 = vld [vmem:[#allocation13 + $0x70] sm:$0xff]  ;;  %v4322_v32 = vld [vmem:[#allocation13 + $0x20] sm:$0xff]  ;;  %v4321_v34 = vld [vmem:[#allocation13 + $0x18] sm:$0xff] }
 0x1c4   : > { %v4330_v33 = vld [vmem:[#allocation13 + $0x60] sm:$0xff]  ;;  %v4329_v35 = vld [vmem:[#allocation13 + $0x58] sm:$0xff]  ;;  %v4319_v51 = vld [vmem:[#allocation13 + $0x8] sm:$0xff] }
 0x1c5   : > { %v953_v44 = vadd.f32 %v945_v31, %v940_v40  ;;  %v954_v45 = vadd.f32 %v946_v50, %v941_v41  ;;  %v955_v63 = vadd.f32 %v947_v36, %v942_v42  ;;  %v956_v58 = vadd.f32 %v948_v37, %v943_v43  ;;  %v4331_v31 = vld [vmem:[#allocation13 + $0x68] sm:$0xff]  ;;  %v4320_v50 = vld [vmem:[#allocation13 + $0x10] sm:$0xff]  ;;  %v4318_v59 = vld [vmem:[#allocation13] sm:$0xff] }
 0x1c6   : > { %v4328_v36 = vld [vmem:[#allocation13 + $0x50] sm:$0xff]  ;;  %v4327_v38 = vld [vmem:[#allocation13 + $0x48] sm:$0xff]  ;;  %v4326_v40 = vld [vmem:[#allocation13 + $0x40] sm:$0xff] }
 0x1c7   : > { %v957_v46 = vpack.c.bf16 %v953_v44, %v953_v44  ;;  %v958_v47 = vpack.c.bf16 %v954_v45, %v954_v45  ;;  %v959_v48 = vpack.c.bf16 %v955_v63, %v955_v63  ;;  %v960_v49 = vpack.c.bf16 %v956_v58, %v956_v58 }
 0x1c9   : > { %1359 = vmatmul.bf16.vlgmr.msrb.gmra.mxu0 %v957_v46  ;;  %1372 = vmatmul.bf16.vlgmr.msrb.gmra.mxu1 %v958_v47 }
 0x1ca   : > { %1385 = vmatmul.bf16.vlgmr.msrb.gmra.mxu2 %v959_v48  ;;  %1398 = vmatmul.bf16.vlgmr.msrb.gmra.mxu3 %v960_v49 }
 0x1cb   : > { %1637 = vmatpush.bf16.msrb.mxu0 %v4325_v26  ;;  %1650 = vmatpush.bf16.msrb.mxu1 %v4333_v27  ;;  %v4335_v26 = vld [vmem:[#allocation16 + $0x8] sm:$0xff] }
 0x1cf   : > { %1638 = vmatpush.bf16.msrb.mxu0 %v4324_v28  ;;  %1651 = vmatpush.bf16.msrb.mxu1 %v4332_v29  ;;  %v4334_v28 = vld [vmem:[#allocation16] sm:$0xff] }
 0x1d3   : > { %1639 = vmatpush.bf16.msrb.mxu0 %v4323_v30  ;;  %1652 = vmatpush.bf16.msrb.mxu1 %v4331_v31 }
 0x1d7   : > { %1640 = vmatpush.bf16.msrb.mxu0 %v4322_v32  ;;  %1653 = vmatpush.bf16.msrb.mxu1 %v4330_v33  ;;  %v4349_v33 = vld [vmem:[#allocation19 + $0x38] sm:$0xff] }
 0x1d8   : > { %1851 = vmatpush.bf16.msrb.mxu3 %v4349_v33 }
 0x1d9   : > { %1411 = vmatmul.bf16.vlgmr.msra.gmra.mxu0 %v957_v46  ;;  %1424 = vmatmul.bf16.vlgmr.msra.gmra.mxu1 %v958_v47 }
 0x1da   : > { %1437 = vmatmul.bf16.vlgmr.msra.gmra.mxu2 %v959_v48  ;;  %1450 = vmatmul.bf16.vlgmr.msra.gmra.mxu3 %v960_v49 }
 0x1db   : > { %1641 = vmatpush.bf16.msrb.mxu0 %v4321_v34  ;;  %1654 = vmatpush.bf16.msrb.mxu1 %v4329_v35  ;;  %v4348_v35 = vld [vmem:[#allocation19 + $0x30] sm:$0xff] }
 0x1dc   : > { %1852 = vmatpush.bf16.msrb.mxu3 %v4348_v35  ;;  %v3902_v35 = vld [vmem:[#allocation9 + $0x70] sm:$0xf] }
 0x1df   : > { %1642 = vmatpush.bf16.msrb.mxu0 %v4320_v50  ;;  %1655 = vmatpush.bf16.msrb.mxu1 %v4328_v36  ;;  %v4347_v36 = vld [vmem:[#allocation19 + $0x28] sm:$0xff] }
 0x1e0   : > { %1853 = vmatpush.bf16.msrb.mxu3 %v4347_v36  ;;  %v3966_v36 = vld [vmem:[#allocation9 + $0xf0] sm:$0xf] }
 0x1e3   : > { %1643 = vmatpush.bf16.msrb.mxu0 %v4319_v51  ;;  %1656 = vmatpush.bf16.msrb.mxu1 %v4327_v38 }
 0x1e7   : > { %1644 = vmatpush.bf16.msrb.mxu0 %v4318_v59  ;;  %1657 = vmatpush.bf16.msrb.mxu1 %v4326_v40 }
 0x246   : > { %v1360_v52 = vpop.f32.mrf.mxu0  ;;  %v1373_v53 = vpop.f32.mrf.mxu1 }
 0x247   : > { %v1361_v62 = vadd.f32 %v1360_v52, %v1027_v57  ;;  %v1459_v52 = vld [vmem:[%s5822_s11] sm:$0x3] }
 0x248   : > { %v1490_v57 = vperm.slane %v1459_v52, 0 }
 0x249   : > { %v1374_v3 = vadd.f32 %v1373_v53, %v1361_v62 }
 0x24d   : > { %v1386_v55 = vpop.f32.mrf.mxu2  ;;  %v1399_v56 = vpop.f32.mrf.mxu3 }
 0x24e   : > { %v1362_v60 = vpop.f32.mrf.mxu0  ;;  %v1375_v61 = vpop.f32.mrf.mxu1  ;;  %v1387_v6 = vadd.f32 %v1386_v55, %v1374_v3 }
 0x24f   : > { %v1491_v60 = vperm.slane %v1459_v52, 1  ;;  %v4343_v52 = vld [vmem:[#allocation19 + $0x8] sm:$0xff] }
 0x250   : > { %v1400_v8 = vadd.f32 %v1399_v56, %v1387_v6 }
 0x252   : > { %v1455_v15 = vmul.f32 0.01, %v1400_v8 }
 0x254   : > { %v5599_v18 = vmax.f32 %v1400_v8, %v1455_v15 }
 0x255   : > { %v1388_v1 = vpop.f32.mrf.mxu2  ;;  %v1401_v2 = vpop.f32.mrf.mxu3 }
 0x256   : > { %v1412_v4 = vpop.f32.mrf.mxu0  ;;  %v1425_v5 = vpop.f32.mrf.mxu1  ;;  %v1464_v24 = vmul.f32 %v5599_v18, %v5599_v18  ;;  %v1498_v2 = vperm.slane %v1460_v54, 1 }
 0x257   : > { %v1413_v7 = vadd.f32 %v1412_v4, %v1028_v0  ;;  %v1497_v0 = vperm.slane %v1460_v54, 0  ;;  %v3834_v54 = vld [vmem:[#allocation4 + $0x28] sm:$0xf] }
 0x259   : > { %v1426_v9 = vadd.f32 %v1425_v5, %v1413_v7 }
 0x25d   : > { %v1438_v10 = vpop.f32.mrf.mxu2  ;;  %v1451_v11 = vpop.f32.mrf.mxu3 }
 0x25e   : > { %v1439_v12 = vadd.f32 %v1438_v10, %v1426_v9  ;;  %v1414_v13 = vpop.f32.mrf.mxu0  ;;  %v1427_v14 = vpop.f32.mrf.mxu1  ;;  %v4683_v9 = vld [vmem:[%s5823_s20] ss:$0 sm:$0xff] }
 0x260   : > { %v1452_v16 = vadd.f32 %v1451_v11, %v1439_v12 }
 0x262   : > { %v1456_v17 = vmul.f32 0.01, %v1452_v16 }
 0x264   : > { %v5601_v19 = vmax.f32 %v1452_v16, %v1456_v17 }
 0x265   : > { %v1440_v20 = vpop.f32.mrf.mxu2  ;;  %v1453_v21 = vpop.f32.mrf.mxu3 }
 0x266   : > { %v1461_v22 = vadd.f32 %v5601_v19, %v5599_v18  ;;  %v1465_v23 = vmul.f32 %v5601_v19, %v5601_v19  ;;  %v4340_v20 = vld [vmem:[#allocation16 + $0x30] sm:$0xff]  ;;  %v4339_v21 = vld [vmem:[#allocation16 + $0x28] sm:$0xff] }
 0x268   : > { %1462 = vadd.xlane.f32.xlu1 %v1461_v22  ;;  %v1466_v25 = vadd.f32 %v1465_v23, %v1464_v24  ;;  %v4338_v22 = vld [vmem:[#allocation16 + $0x20] sm:$0xff]  ;;  %v4337_v23 = vld [vmem:[#allocation16 + $0x18] sm:$0xff]  ;;  %v4336_v24 = vld [vmem:[#allocation16 + $0x10] sm:$0xff] }
 0x270   : > { %1467 = vadd.xlane.f32.xlu1 %v1466_v25 }
 0x2db   : > { %v1463_v37 = vpop.xlane.xlu1 %1462 }
 0x2dc   : > { %v1469_v39 = vmul.f32 0.00390625, %v1463_v37  ;;  %v4346_v37 = vld [vmem:[#allocation19 + $0x20] sm:$0xff] }
 0x2dd   : > { %1854 = vmatpush.bf16.msrb.mxu3 %v4346_v37 }
 0x2de   : > { %v1471_v42 = vmul.f32 %v1469_v39, %v1469_v39  ;;  %v1474_v55 = vsub.f32 %v5599_v18, %v1469_v39  ;;  %v1475_v56 = vsub.f32 %v5601_v19, %v1469_v39  ;;  %v4341_v19 = vld [vmem:[#allocation16 + $0x38] sm:$0xff] }
 0x2df   : > { %1767 = vmatpush.bf16.msrb.mxu2 %v4341_v19  ;;  %v4345_v39 = vld [vmem:[#allocation19 + $0x18] sm:$0xff] }
 0x2e0   : > { %v4686_v19 = vld [vmem:[#allocation18] ss:$0 sm:$0xff] }
 0x2e1   : > { %1855 = vmatpush.bf16.msrb.mxu3 %v4345_v39  ;;  %v4405_v39 = vld [vmem:[#allocation9 + $0x174] sm:$0xf0] }
 0x2e3   : > { %v1468_v41 = vpop.xlane.xlu1 %1467  ;;  %1768 = vmatpush.bf16.msrb.mxu2 %v4340_v20 }
 0x2e4   : > { %v1470_v43 = vmul.f32 0.00390625, %v1468_v41  ;;  %v4344_v41 = vld [vmem:[#allocation19 + $0x10] sm:$0xff] }
 0x2e5   : > { %1856 = vmatpush.bf16.msrb.mxu3 %v4344_v41  ;;  %v4094_v41 = vld [vmem:[#allocation9 + $0x1f0] sm:$0xf] }
 0x2e6   : > { %v1472_v44 = vsub.f32 %v1470_v43, %v1471_v42 }
 0x2e7   : > { %1769 = vmatpush.bf16.msrb.mxu2 %v4339_v21 }
 0x2e8   : > { %v1473_v45 = vmax.f32 %v1472_v44, 0.0 }
 0x2e9   : > { %1857 = vmatpush.bf16.msrb.mxu3 %v4343_v52  ;;  %v4086_v52 = vld [vmem:[#allocation9 + $0x1e0] sm:$0xf] }
 0x2ea   : > { %v1476_v63 = vadd.f32 1e-05, %v1473_v45  ;;  %v4684_v45 = vld [vmem:[%s5824_s17] ss:$0 sm:$0xff] }
 0x2eb   : > { %1770 = vmatpush.bf16.msrb.mxu2 %v4338_v22 }
 0x2ec   : > { %4695 = vrsqrt.f32 %v1476_v63  ;;  %vm1483_vm5 = vweird.f32 %v1476_v63 }
 0x2ef   : > { %1771 = vmatpush.bf16.msrb.mxu2 %v4337_v23 }
 0x2f2   : > { %v4696_v58 = vpop.eup %4695 }
 0x2f3   : > { %v1478_v46 = vmul.f32 %v4696_v58, %v1476_v63  ;;  %vm1484_vm4 = vweird.f32 %v4696_v58  ;;  %1772 = vmatpush.bf16.msrb.mxu2 %v4336_v24 }
 0x2f4   : > { %vm1485_vm6 = vmor %vm1483_vm5, %vm1484_vm4 }
 0x2f5   : > { %v1479_v47 = vmul.f32 %v4696_v58, %v1478_v46  ;;  %v4685_v46 = vld [vmem:[#allocation15] ss:$0 sm:$0xff] }
 0x2f7   : > { %v1480_v48 = vmul.f32 0.5, %v1479_v47  ;;  %1773 = vmatpush.bf16.msrb.mxu2 %v4335_v26 }
 0x2f9   : > { %v1481_v49 = vsub.f32 1.5, %v1480_v48 }
 0x2fb   : > { %v1482_v53 = vmul.f32 %v4696_v58, %v1481_v49  ;;  %1774 = vmatpush.bf16.msrb.mxu2 %v4334_v28 }
 0x2fd   : > { %v1486_v61 = vsel %vm1485_vm6, %v4696_v58, %v1482_v53  ;;  %v4342_v53 = vld [vmem:[#allocation19] sm:$0xff] }
 0x2fe   : > { %v1487_v62 = vmul.f32 %v1486_v61, %v1474_v55  ;;  %v1488_v1 = vmul.f32 %v1486_v61, %v1475_v56  ;;  %v4357_v55 = vld [vmem:[#allocation4 + $0x34] sm:$0xf0]  ;;  %1858 = vmatpush.bf16.msrb.mxu3 %v4342_v53  ;;  %v3826_v61 = vld [vmem:[#allocation4 + $0x20] sm:$0xf] }
 0x2ff   : > { %v3835_v56 = vor.u32 %v4357_v55, %v3834_v54  ;;  %v4419_v55 = vld [vmem:[#allocation9 + $0x1e4] sm:$0xf0] }
 0x300   : > { %v1494_v3 = vmul.f32 %v1490_v57, %v1487_v62  ;;  %v1495_v4 = vmul.f32 %v1491_v60, %v1488_v1  ;;  %v4355_v57 = vld [vmem:[#allocation4 + $0x2c] sm:$0xf]  ;;  %v3836_v60 = vld [vmem:[#allocation4 + $0x38] sm:$0xf0]  ;;  %v4354_v1 = vld [vmem:[#allocation4 + $0x24] sm:$0xf] }
 0x301   : > { %1982 = vmatpush.bf16.msra.mxu2 %v3835_v56  ;;  %v3839_v62 = vor.u32 %v4355_v57, %v3836_v60  ;;  %v4087_v56 = vor.u32 %v4419_v55, %v4086_v52  ;;  %v4413_v55 = vld [vmem:[#allocation9 + $0x1b4] sm:$0xf0] }
 0x302   : > { %v1501_v5 = vadd.f32 %v1497_v0, %v1494_v3  ;;  %v1502_v6 = vadd.f32 %v1498_v2, %v1495_v4  ;;  %v4356_v0 = vld [vmem:[#allocation4 + $0x2c] sm:$0xf0]  ;;  %v3828_v2 = vld [vmem:[#allocation4 + $0x30] sm:$0xf0] }
 0x303   : > { %v3827_v3 = vor.u32 %v4356_v0, %v3826_v61  ;;  %v3831_v4 = vor.u32 %v4354_v1, %v3828_v2  ;;  %1995 = vmatpush.bf16.msra.mxu3 %v3839_v62 }
 0x304   : > { %v1503_v7 = vpack.c.bf16 %v1501_v5, %v1501_v5  ;;  %v1504_v8 = vpack.c.bf16 %v1502_v6, %v1502_v6  ;;  %v3818_v5 = vld [vmem:[#allocation4 + $0x8] sm:$0xf]  ;;  %v4353_v6 = vld [vmem:[#allocation4 + $0x14] sm:$0xf0] }
 0x305   : > { %1956 = vmatpush.bf16.msra.mxu0 %v3827_v3  ;;  %1969 = vmatpush.bf16.msra.mxu1 %v3831_v4 }
 0x306   : > { %1645 = vmatmul.bf16.vlgmr.msrb.gmra.mxu0 %v1503_v7  ;;  %1658 = vmatmul.bf16.vlgmr.msrb.gmra.mxu1 %v1504_v8  ;;  %v1887_v7 = vld [vmem:[%s645_s1 + $0x8] sm:$0xff]  ;;  %v3819_v8 = vor.u32 %v4353_v6, %v3818_v5  ;;  %s5716_s1 = scalar_lea.vmem (%p5395_p10), %s5827_s28, %s4454_s27  }
 0x308   : > { %1983 = vmatpush.bf16.msra.mxu2 %v3819_v8 }
 0x383   : > { %v1646_v10 = vpop.f32.mrf.mxu0  ;;  %v1659_v11 = vpop.f32.mrf.mxu1 }
 0x384   : > { %v1647_v12 = vadd.f32 %v4683_v9, %v1646_v10  ;;  %v3810_v9 = vld [vmem:[#allocation4] sm:$0xf]  ;;  %v4352_v10 = vld [vmem:[#allocation4 + $0xc] sm:$0xf0] }
 0x386   : > { %v1660_v13 = vadd.f32 %v1659_v11, %v1647_v12  ;;  %v4350_v11 = vld [vmem:[#allocation4 + $0x4] sm:$0xf]  ;;  %v1888_v12 = vpack.c.bf16 %v1887_v7, %v1887_v7 }
 0x388   : > { %v1663_v14 = vmul.f32 0.01, %v1660_v13 }
 0x38a   : > { %v1664_v15 = vmax.f32 %v1660_v13, %v1663_v14  ;;  %v3811_v13 = vor.u32 %v4352_v10, %v3810_v9  ;;  %v3812_v14 = vld [vmem:[#allocation4 + $0x10] sm:$0xf0] }
 0x38b   : > { %v1648_v16 = vpop.f32.mrf.mxu0  ;;  %v1661_v17 = vpop.f32.mrf.mxu1 }
 0x38c   : > { %1667 = vadd.xlane.f32.xlu2 %v1664_v15  ;;  %v1669_v18 = vmul.f32 %v1664_v15, %v1664_v15  ;;  %v3820_v16 = vld [vmem:[#allocation4 + $0x18] sm:$0xf0]  ;;  %v3815_v17 = vor.u32 %v4350_v11, %v3812_v14  ;;  %1957 = vmatpush.bf16.msra.mxu0 %v3811_v13 }
 0x38e   : > { %1970 = vmatpush.bf16.msra.mxu1 %v3815_v17 }
 0x38f   : > { %3840 = vmatmul.msk.bf16.vlgmr.msra.gmra.mxu0 %vm827_vm0, %v1888_v12 }
 0x391   : > { %3841 = vmatmul.msk.bf16.vlgmr.msra.gmra.mxu1 %vm827_vm0, %v1888_v12 }
 0x394   : > { %1670 = vadd.xlane.f32.xlu2 %v1669_v18 }
 0x3ff   : > { %v1668_v25 = vpop.xlane.xlu2 %1667 }
 0x400   : > { %v1672_v27 = vmul.f32 0.0078125, %v1668_v25 }
 0x402   : > { %v1674_v30 = vmul.f32 %v1672_v27, %v1672_v27  ;;  %v1677_v44 = vsub.f32 %v1664_v15, %v1672_v27  ;;  %v4351_v15 = vld [vmem:[#allocation4 + $0xc] sm:$0xf] }
 0x403   : > { %v3823_v18 = vor.u32 %v4351_v15, %v3820_v16 }
 0x405   : > { %1996 = vmatpush.bf16.msra.mxu3 %v3823_v18 }
 0x407   : > { %v1671_v29 = vpop.xlane.xlu2 %1670 }
 0x408   : > { %v1673_v31 = vmul.f32 0.0078125, %v1671_v29 }
 0x40a   : > { %v1675_v32 = vsub.f32 %v1673_v31, %v1674_v30 }
 0x40c   : > { %v1676_v34 = vmax.f32 %v1675_v32, 0.0  ;;  %v1959_v26 = vpop.f32.mrf.mxu0  ;;  %v1897_v32 = vld [vmem:[#allocation6] sm:$0xf] }
 0x40d   : > { %v1899_v33 = vperm.slane %v1897_v32, 0  ;;  %v1901_v61 = vperm.slane %v1897_v32, 2  ;;  %v1902_v6 = vperm.slane %v1897_v32, 3 }
 0x40e   : > { %v1678_v50 = vadd.f32 1e-05, %v1676_v34  ;;  %v1972_v27 = vpop.f32.mrf.mxu1  ;;  %v1900_v34 = vperm.slane %v1897_v32, 1  ;;  %v4078_v32 = vld [vmem:[#allocation9 + $0x1d0] sm:$0xf] }
 0x40f   : > { %v1960_v57 = vadd.f32 %v1959_v26, %v1899_v33  ;;  %v4417_v33 = vld [vmem:[#allocation9 + $0x1d4] sm:$0xf0] }
 0x410   : > { %4697 = vrsqrt.f32 %v1678_v50  ;;  %vm1685_vm8 = vweird.f32 %v1678_v50  ;;  %v1973_v60 = vadd.f32 %v1972_v27, %v1900_v34  ;;  %v4385_v27 = vld [vmem:[#allocation9 + $0xd4] sm:$0xf0]  ;;  %v4079_v34 = vor.u32 %v4417_v33, %v4078_v32  ;;  %v4038_v33 = vld [vmem:[#allocation9 + $0x180] sm:$0xf] }
 0x411   : > { %v2002_v62 = vmul.f32 0.01, %v1960_v57 }
 0x412   : > { %v2003_v0 = vmul.f32 0.01, %v1973_v60 }
 0x413   : > { %v5628_v3 = vmax.f32 %v1960_v57, %v2002_v62  ;;  %v3862_v57 = vld [vmem:[#allocation9 + $0x20] sm:$0xf] }
 0x414   : > { %v1961_v29 = vpop.f32.mrf.mxu0  ;;  %v5630_v4 = vmax.f32 %v1973_v60, %v2003_v0  ;;  %v4363_v60 = vld [vmem:[#allocation9 + $0x24] sm:$0xf0] }
 0x415   : > { %v2017_v7 = vmul.f32 %v5628_v3, %v5628_v3  ;;  %v4401_v29 = vld [vmem:[#allocation9 + $0x154] sm:$0xf0]  ;;  %v3863_v62 = vor.u32 %v4363_v60, %v3862_v57  ;;  %v4379_v0 = vld [vmem:[#allocation9 + $0xa4] sm:$0xf0]  ;;  %v4368_v60 = vld [vmem:[#allocation9 + $0x54] sm:$0xf] }
 0x416   : > { %v4698_v51 = vpop.eup %4697  ;;  %v1974_v30 = vpop.f32.mrf.mxu1  ;;  %v2018_v8 = vmul.f32 %v5630_v4, %v5630_v4 }
 0x417   : > { %v1680_v38 = vmul.f32 %v4698_v51, %v1678_v50  ;;  %vm1686_vm7 = vweird.f32 %v4698_v51  ;;  %v4373_v50 = vld [vmem:[#allocation9 + $0x74] sm:$0xf0] }
 0x418   : > { %vm1687_vm9 = vmor %vm1685_vm8, %vm1686_vm7  ;;  %v3903_v37 = vor.u32 %v4373_v50, %v3902_v35  ;;  %v2021_v15 = vadd.f32 %v2018_v8, %v2017_v7  ;;  %v3878_v35 = vld [vmem:[#allocation9 + $0x40] sm:$0xf]  ;;  %v4367_v50 = vld [vmem:[#allocation9 + $0x44] sm:$0xf0] }
 0x419   : > { %v1681_v59 = vmul.f32 %v4698_v51, %v1680_v38  ;;  %v4030_v38 = vld [vmem:[#allocation9 + $0x170] sm:$0xf]  ;;  %v4054_v7 = vld [vmem:[#allocation9 + $0x1a0] sm:$0xf]  ;;  %v4411_v8 = vld [vmem:[#allocation9 + $0x1a4] sm:$0xf0] }
 0x41a   : > { %2470 = vmatpush.bf16.msrb.mxu0 %v3903_v37  ;;  %v3879_v37 = vor.u32 %v4367_v50, %v3878_v35  ;;  %v4372_v35 = vld [vmem:[#allocation9 + $0x74] sm:$0xf] }
 0x41b   : > { %v1682_v40 = vmul.f32 0.5, %v1681_v59 }
 0x41d   : > { %v1683_v42 = vsub.f32 1.5, %v1682_v40  ;;  %v4031_v40 = vor.u32 %v4405_v39, %v4030_v38  ;;  %v4006_v38 = vld [vmem:[#allocation9 + $0x140] sm:$0xf]  ;;  %v4399_v39 = vld [vmem:[#allocation9 + $0x144] sm:$0xf0] }
 0x41f   : > { %v1684_v43 = vmul.f32 %v4698_v51, %v1683_v42  ;;  %v4421_v42 = vld [vmem:[#allocation9 + $0x1f4] sm:$0xf0] }
 0x421   : > { %v1688_v63 = vsel %vm1687_vm9, %v4698_v51, %v1684_v43  ;;  %v4389_v51 = vld [vmem:[#allocation9 + $0xf4] sm:$0xf0]  ;;  %v3894_v43 = vld [vmem:[#allocation9 + $0x60] sm:$0xf] }
 0x422   : > { %v1689_v58 = vmul.f32 %v1688_v63, %v1677_v44  ;;  %v3967_v59 = vor.u32 %v4389_v51, %v3966_v36  ;;  %v4095_v44 = vor.u32 %v4421_v42, %v4094_v41  ;;  %v3958_v63 = vld [vmem:[#allocation9 + $0xe0] sm:$0xf]  ;;  %v4383_v51 = vld [vmem:[#allocation9 + $0xc4] sm:$0xf0] }
 0x423   : > { %v3942_v36 = vld [vmem:[#allocation9 + $0xc0] sm:$0xf]  ;;  %v4415_v42 = vld [vmem:[#allocation9 + $0x1c4] sm:$0xf0] }
 0x424   : > { %v1693_v47 = vmul.f32 %v4684_v45, %v1689_v58  ;;  %v4371_v45 = vld [vmem:[#allocation9 + $0x64] sm:$0xf0]  ;;  %2483 = vmatpush.bf16.msrb.mxu1 %v3967_v59  ;;  %v3943_v59 = vor.u32 %v4383_v51, %v3942_v36  ;;  %v4070_v41 = vld [vmem:[#allocation9 + $0x1c0] sm:$0xf]  ;;  %v3904_v36 = vld [vmem:[#allocation9 + $0x78] sm:$0xf0] }
 0x425   : > { %v4387_v58 = vld [vmem:[#allocation9 + $0xe4] sm:$0xf0]  ;;  %v3968_v51 = vld [vmem:[#allocation9 + $0xf8] sm:$0xf0] }
 0x426   : > { %v1697_v48 = vadd.f32 %v4685_v46, %v1693_v47  ;;  %v3895_v46 = vor.u32 %v4371_v45, %v3894_v43  ;;  %v3959_v47 = vor.u32 %v4387_v58, %v3958_v63  ;;  %v4071_v43 = vor.u32 %v4415_v42, %v4070_v41  ;;  %v4365_v45 = vld [vmem:[#allocation9 + $0x34] sm:$0xf0]  ;;  %v3934_v63 = vld [vmem:[#allocation9 + $0xb0] sm:$0xf]  ;;  %v4420_v41 = vld [vmem:[#allocation9 + $0x1f4] sm:$0xf] }
 0x428   : > { %v1698_v49 = vpack.c.bf16 %v1697_v48, %v1697_v48  ;;  %v4022_v48 = vld [vmem:[#allocation9 + $0x160] sm:$0xf]  ;;  %2471 = vmatpush.bf16.msrb.mxu0 %v3895_v46  ;;  %2484 = vmatpush.bf16.msrb.mxu1 %v3959_v47  ;;  %v4381_v46 = vld [vmem:[#allocation9 + $0xb4] sm:$0xf0]  ;;  %v3998_v47 = vld [vmem:[#allocation9 + $0x130] sm:$0xf] }
 0x42a   : > { %1775 = vmatmul.bf16.vlgmr.msrb.gmra.mxu2 %v1698_v49  ;;  %v4403_v49 = vld [vmem:[#allocation9 + $0x164] sm:$0xf0] }
 0x42b   : > { %2496 = vmatpush.bf16.msrb.mxu2 %v4031_v40  ;;  %v4023_v54 = vor.u32 %v4403_v49, %v4022_v48  ;;  %v4007_v40 = vor.u32 %v4399_v39, %v4006_v38  ;;  %v4397_v48 = vld [vmem:[#allocation9 + $0x134] sm:$0xf0]  ;;  %v3935_v49 = vor.u32 %v4381_v46, %v3934_v63  ;;  %v3907_v38 = vor.u32 %v4372_v35, %v3904_v36  ;;  %v4386_v46 = vld [vmem:[#allocation9 + $0xe4] sm:$0xf]  ;;  %v4396_v36 = vld [vmem:[#allocation9 + $0x134] sm:$0xf] }
 0x42c   : > { %v3999_v52 = vor.u32 %v4397_v48, %v3998_v47  ;;  %v3960_v47 = vld [vmem:[#allocation9 + $0xe8] sm:$0xf0]  ;;  %v4402_v48 = vld [vmem:[#allocation9 + $0x164] sm:$0xf] }
 0x42f   : > { %2497 = vmatpush.bf16.msrb.mxu2 %v4023_v54  ;;  %v4062_v54 = vld [vmem:[#allocation9 + $0x1b0] sm:$0xf] }
 0x43a   : > { %3842 = vmatmul.msk.bf16.vlgmr.msra.gmra.mxu2 %vm827_vm0, %v1888_v12 }
 0x4ad   : > { %v1776_v20 = vpop.f32.mrf.mxu2 }
 0x4ae   : > { %v1777_v21 = vadd.f32 %v4686_v19, %v1776_v20 }
 0x4b0   : > { %v1780_v22 = vmul.f32 0.01, %v1777_v21 }
 0x4b2   : > { %v1781_v23 = vmax.f32 %v1777_v21, %v1780_v22 }
 0x4b4   : > { %v1782_v24 = vpack.c.bf16 %v1781_v23, %v1781_v23  ;;  %v3886_v23 = vld [vmem:[#allocation9 + $0x50] sm:$0xf] }
 0x4b5   : > { %v1778_v25 = vpop.f32.mrf.mxu2 }
 0x4b6   : > { %1859 = vmatmul.bf16.vlgmr.msrb.gmra.mxu3 %v1782_v24  ;;  %v4369_v24 = vld [vmem:[#allocation9 + $0x54] sm:$0xf0]  ;;  %v3950_v25 = vld [vmem:[#allocation9 + $0xd0] sm:$0xf] }
 0x4b7   : > { %2509 = vmatpush.bf16.msrb.mxu3 %v4095_v44  ;;  %v3887_v26 = vor.u32 %v4369_v24, %v3886_v23  ;;  %v3951_v30 = vor.u32 %v4385_v27, %v3950_v25  ;;  %v3870_v44 = vld [vmem:[#allocation9 + $0x30] sm:$0xf]  ;;  %v3846_v24 = vld [vmem:[#allocation9] sm:$0xf]  ;;  %v4359_v25 = vld [vmem:[#allocation9 + $0x4] sm:$0xf0] }
 0x4b8   : > { %v3871_v58 = vor.u32 %v4365_v45, %v3870_v44  ;;  %v3847_v27 = vor.u32 %v4359_v25, %v3846_v24  ;;  %v4370_v44 = vld [vmem:[#allocation9 + $0x64] sm:$0xf]  ;;  %v3896_v45 = vld [vmem:[#allocation9 + $0x68] sm:$0xf0] }
 0x4b9   : > { %2472 = vmatpush.bf16.msrb.mxu0 %v3887_v26  ;;  %2485 = vmatpush.bf16.msrb.mxu1 %v3951_v30  ;;  %v3910_v26 = vld [vmem:[#allocation9 + $0x80] sm:$0xf]  ;;  %v4391_v30 = vld [vmem:[#allocation9 + $0x104] sm:$0xf0]  ;;  %v4072_v24 = vld [vmem:[#allocation9 + $0x1c8] sm:$0xf0] }
 0x4bb   : > { %2510 = vmatpush.bf16.msrb.mxu3 %v4087_v56  ;;  %v4063_v56 = vor.u32 %v4413_v55, %v4062_v54  ;;  %v4418_v54 = vld [vmem:[#allocation9 + $0x1e4] sm:$0xf]  ;;  %v4088_v55 = vld [vmem:[#allocation9 + $0x1e8] sm:$0xf0] }
 0x4bc   : > { %v4091_v57 = vor.u32 %v4418_v54, %v4088_v55  ;;  %v4360_v54 = vld [vmem:[#allocation9 + $0x14] sm:$0xf] }
 0x4bd   : > { %v1985_v28 = vpop.f32.mrf.mxu2  ;;  %2473 = vmatpush.bf16.msrb.mxu0 %v3879_v37  ;;  %2486 = vmatpush.bf16.msrb.mxu1 %v3943_v59  ;;  %v4388_v37 = vld [vmem:[#allocation9 + $0xf4] sm:$0xf] }
 0x4be   : > { %v1986_v1 = vadd.f32 %v1985_v28, %v1901_v61  ;;  %v4014_v28 = vld [vmem:[#allocation9 + $0x150] sm:$0xf]  ;;  %v3926_v61 = vld [vmem:[#allocation9 + $0xa0] sm:$0xf]  ;;  %v3971_v39 = vor.u32 %v4388_v37, %v3968_v51  ;;  %v4404_v59 = vld [vmem:[#allocation9 + $0x174] sm:$0xf] }
 0x4bf   : > { %2511 = vmatpush.bf16.msrb.mxu3 %v4079_v34  ;;  %v4407_v34 = vld [vmem:[#allocation9 + $0x184] sm:$0xf0]  ;;  %v4000_v37 = vld [vmem:[#allocation9 + $0x138] sm:$0xf0]  ;;  %v4412_v51 = vld [vmem:[#allocation9 + $0x1b4] sm:$0xf] }
 0x4c0   : > { %v2004_v5 = vmul.f32 0.01, %v1986_v1  ;;  %v4039_v50 = vor.u32 %v4407_v34, %v4038_v33  ;;  %v4380_v33 = vld [vmem:[#allocation9 + $0xb4] sm:$0xf]  ;;  %v3936_v34 = vld [vmem:[#allocation9 + $0xb8] sm:$0xf0] }
 0x4c1   : > { %2474 = vmatpush.bf16.msrb.mxu0 %v3871_v58  ;;  %2487 = vmatpush.bf16.msrb.mxu1 %v3935_v49  ;;  %v3899_v58 = vor.u32 %v4370_v44, %v3896_v45  ;;  %v3963_v49 = vor.u32 %v4386_v46, %v3960_v47  ;;  %v3928_v44 = vld [vmem:[#allocation9 + $0xa8] sm:$0xf0]  ;;  %v4394_v46 = vld [vmem:[#allocation9 + $0x124] sm:$0xf] }
 0x4c2   : > { %v5636_v9 = vmax.f32 %v1986_v1, %v2004_v5  ;;  %v3990_v1 = vld [vmem:[#allocation9 + $0x120] sm:$0xf]  ;;  %v3927_v5 = vor.u32 %v4379_v0, %v3926_v61  ;;  %v3888_v61 = vld [vmem:[#allocation9 + $0x58] sm:$0xf0]  ;;  %v3992_v47 = vld [vmem:[#allocation9 + $0x128] sm:$0xf0] }
 0x4c3   : > { %2512 = vmatpush.bf16.msrb.mxu3 %v4071_v43  ;;  %v4096_v43 = vld [vmem:[#allocation9 + $0x1f8] sm:$0xf0]  ;;  %v3891_v0 = vor.u32 %v4368_v60, %v3888_v61 }
 0x4c4   : > { %v2019_v14 = vmul.f32 %v5636_v9, %v5636_v9  ;;  %v4099_v63 = vor.u32 %v4420_v41, %v4096_v43  ;;  %v4378_v43 = vld [vmem:[#allocation9 + $0xa4] sm:$0xf]  ;;  %v3920_v60 = vld [vmem:[#allocation9 + $0x98] sm:$0xf0] }
 0x4c5   : > { %v1987_v31 = vpop.f32.mrf.mxu2  ;;  %2475 = vmatpush.bf16.msrb.mxu0 %v3863_v62  ;;  %2488 = vmatpush.bf16.msrb.mxu1 %v3927_v5  ;;  %v4384_v62 = vld [vmem:[#allocation9 + $0xd4] sm:$0xf]  ;;  %v4016_v5 = vld [vmem:[#allocation9 + $0x158] sm:$0xf0] }
 0x4c6   : > { %3843 = vmatmul.msk.bf16.vlgmr.msra.gmra.mxu3 %vm827_vm0, %v1888_v12  ;;  %v2012_v12 = vadd.f32 %v5630_v4, %v5628_v3  ;;  %v2022_v20 = vadd.f32 %v2021_v15, %v2019_v14  ;;  %v4015_v31 = vor.u32 %v4401_v29, %v4014_v28  ;;  %v4377_v15 = vld [vmem:[#allocation9 + $0x94] sm:$0xf0]  ;;  %v4375_v28 = vld [vmem:[#allocation9 + $0x84] sm:$0xf0]  ;;  %v3974_v29 = vld [vmem:[#allocation9 + $0x100] sm:$0xf] }
 0x4c7   : > { %2513 = vmatpush.bf16.msrb.mxu3 %v4063_v56  ;;  %v3975_v32 = vor.u32 %v4391_v30, %v3974_v29  ;;  %v4364_v30 = vld [vmem:[#allocation9 + $0x34] sm:$0xf] }
 0x4c8   : > { %v2013_v17 = vadd.f32 %v2012_v12, %v5636_v9  ;;  %2498 = vmatpush.bf16.msrb.mxu2 %v4015_v31  ;;  %v4361_v12 = vld [vmem:[#allocation9 + $0x14] sm:$0xf0]  ;;  %v3911_v31 = vor.u32 %v4375_v28, %v3910_v26 }
 0x4cc   : > { %2499 = vmatpush.bf16.msrb.mxu2 %v4007_v40  ;;  %v4032_v40 = vld [vmem:[#allocation9 + $0x178] sm:$0xf0] }
 0x4cd   : > { %v4035_v42 = vor.u32 %v4404_v59, %v4032_v40  ;;  %v4064_v59 = vld [vmem:[#allocation9 + $0x1b8] sm:$0xf0]  ;;  %v4362_v40 = vld [vmem:[#allocation9 + $0x24] sm:$0xf] }
 0x4ce   : > { %v4067_v41 = vor.u32 %v4412_v51, %v4064_v59 }
 0x4d0   : > { %2500 = vmatpush.bf16.msrb.mxu2 %v3999_v52  ;;  %v4024_v52 = vld [vmem:[#allocation9 + $0x168] sm:$0xf0] }
 0x4d1   : > { %v4027_v56 = vor.u32 %v4402_v48, %v4024_v52  ;;  %v3995_v48 = vor.u32 %v4394_v46, %v3992_v47  ;;  %v4056_v52 = vld [vmem:[#allocation9 + $0x1a8] sm:$0xf0] }
 0x539   : > { %v5626_v53 = vpop.f32.mrf.mxu3 }
 0x541   : > { %v1862_v2 = vpop.f32.mrf.mxu3 }
 0x542   : > { %v4395_v2 = vld [vmem:[#allocation9 + $0x124] sm:$0xf0] }
 0x549   : > { %v1998_v10 = vpop.f32.mrf.mxu3 }
 0x54a   : > { %v1999_v11 = vadd.f32 %v1998_v10, %v1902_v6  ;;  %v3991_v6 = vor.u32 %v4395_v2, %v3990_v1  ;;  %v4055_v10 = vor.u32 %v4411_v8, %v4054_v7  ;;  %v3952_v1 = vld [vmem:[#allocation9 + $0xd8] sm:$0xf0]  ;;  %v4400_v2 = vld [vmem:[#allocation9 + $0x154] sm:$0xf] }
 0x54b   : > { %v4019_v7 = vor.u32 %v4400_v2, %v4016_v5  ;;  %v4416_v8 = vld [vmem:[#allocation9 + $0x1d4] sm:$0xf] }
 0x54c   : > { %v2005_v13 = vmul.f32 0.01, %v1999_v11  ;;  %2501 = vmatpush.bf16.msrb.mxu2 %v3991_v6  ;;  %2514 = vmatpush.bf16.msrb.mxu3 %v4055_v10  ;;  %v3955_v6 = vor.u32 %v4384_v62, %v3952_v1  ;;  %v4080_v10 = vld [vmem:[#allocation9 + $0x1d8] sm:$0xf0]  ;;  %v4408_v2 = vld [vmem:[#allocation9 + $0x194] sm:$0xf] }
 0x54d   : > { %v3984_v1 = vld [vmem:[#allocation9 + $0x118] sm:$0xf0] }
 0x54e   : > { %v5642_v16 = vmax.f32 %v1999_v11, %v2005_v13  ;;  %v3854_v11 = vld [vmem:[#allocation9 + $0x10] sm:$0xf] }
 0x54f   : > { %v3918_v13 = vld [vmem:[#allocation9 + $0x90] sm:$0xf]  ;;  %v3855_v14 = vor.u32 %v4361_v12, %v3854_v11  ;;  %v4366_v11 = vld [vmem:[#allocation9 + $0x44] sm:$0xf]  ;;  %v4083_v12 = vor.u32 %v4416_v8, %v4080_v10  ;;  %v3848_v8 = vld [vmem:[#allocation9 + $0x8] sm:$0xf0] }
 0x550   : > { %v2014_v18 = vadd.f32 %v2013_v17, %v5642_v16  ;;  %v2020_v19 = vmul.f32 %v5642_v16, %v5642_v16  ;;  %v3982_v17 = vld [vmem:[#allocation9 + $0x110] sm:$0xf] }
 0x551   : > { %v2000_v21 = vpop.f32.mrf.mxu3  ;;  %2476 = vmatpush.bf16.msrb.mxu0 %v3855_v14  ;;  %v4382_v14 = vld [vmem:[#allocation9 + $0xc4] sm:$0xf] }
 0x552   : > { %2015 = vadd.xlane.f32.xlu0 %v2014_v18  ;;  %v2023_v22 = vadd.f32 %v2022_v20, %v2020_v19  ;;  %v4393_v18 = vld [vmem:[#allocation9 + $0x114] sm:$0xf0]  ;;  %v3919_v19 = vor.u32 %v4377_v15, %v3918_v13  ;;  %v4046_v21 = vld [vmem:[#allocation9 + $0x190] sm:$0xf]  ;;  %v3880_v13 = vld [vmem:[#allocation9 + $0x48] sm:$0xf0] }
 0x553   : > { %v3983_v20 = vor.u32 %v4393_v18, %v3982_v17  ;;  %v3944_v15 = vld [vmem:[#allocation9 + $0xc8] sm:$0xf0]  ;;  %v4398_v18 = vld [vmem:[#allocation9 + $0x144] sm:$0xf] }
 0x554   : > { %2024 = vadd.xlane.f32.xlu1 %v2023_v22  ;;  %v4409_v22 = vld [vmem:[#allocation9 + $0x194] sm:$0xf0]  ;;  %2489 = vmatpush.bf16.msrb.mxu1 %v3919_v19  ;;  %v4008_v19 = vld [vmem:[#allocation9 + $0x148] sm:$0xf0] }
 0x555   : > { %v4047_v23 = vor.u32 %v4409_v22, %v4046_v21  ;;  %2502 = vmatpush.bf16.msrb.mxu2 %v3983_v20  ;;  %2477 = vmatpush.bf16.msrb.mxu0 %v3847_v27  ;;  %v4414_v20 = vld [vmem:[#allocation9 + $0x1c4] sm:$0xf]  ;;  %v3883_v22 = vor.u32 %v4366_v11, %v3880_v13  ;;  %v4011_v26 = vor.u32 %v4398_v18, %v4008_v19 }
 0x556   : > { %v4075_v27 = vor.u32 %v4414_v20, %v4072_v24  ;;  %v4374_v11 = vld [vmem:[#allocation9 + $0x84] sm:$0xf] }
 0x557   : > { %2515 = vmatpush.bf16.msrb.mxu3 %v4047_v23  ;;  %v3947_v23 = vor.u32 %v4382_v14, %v3944_v15  ;;  %v4390_v13 = vld [vmem:[#allocation9 + $0x104] sm:$0xf]  ;;  %v3976_v14 = vld [vmem:[#allocation9 + $0x108] sm:$0xf0] }
 0x558   : > { %2490 = vmatpush.bf16.msrb.mxu1 %v3911_v31  ;;  %v4406_v15 = vld [vmem:[#allocation9 + $0x184] sm:$0xf] }
 0x559   : > { %2503 = vmatpush.bf16.msrb.mxu2 %v3975_v32  ;;  %2522 = vmatpush.bf16.msra.mxu0 %v3907_v38  ;;  %v3872_v32 = vld [vmem:[#allocation9 + $0x38] sm:$0xf0] }
 0x55a   : > { %v3875_v35 = vor.u32 %v4364_v30, %v3872_v32 }
 0x55b   : > { %2516 = vmatpush.bf16.msrb.mxu3 %v4039_v50  ;;  %v3939_v50 = vor.u32 %v4380_v33, %v3936_v34 }
 0x55c   : > { %2535 = vmatpush.bf16.msra.mxu1 %v3971_v39  ;;  %v4003_v39 = vor.u32 %v4396_v36, %v4000_v37 }
 0x55d   : > { %2548 = vmatpush.bf16.msra.mxu2 %v4035_v42  ;;  %2523 = vmatpush.bf16.msra.mxu0 %v3899_v58  ;;  %v3864_v42 = vld [vmem:[#allocation9 + $0x28] sm:$0xf0]  ;;  %v3931_v58 = vor.u32 %v4378_v43, %v3928_v44 }
 0x55f   : > { %2561 = vmatpush.bf16.msra.mxu3 %v4099_v63  ;;  %v3867_v63 = vor.u32 %v4362_v40, %v3864_v42 }
 0x560   : > { %2536 = vmatpush.bf16.msra.mxu1 %v3963_v49  ;;  %v4410_v49 = vld [vmem:[#allocation9 + $0x1a4] sm:$0xf] }
 0x561   : > { %2549 = vmatpush.bf16.msra.mxu2 %v4027_v56  ;;  %2524 = vmatpush.bf16.msra.mxu0 %v3891_v0  ;;  %v4059_v55 = vor.u32 %v4410_v49, %v4056_v52  ;;  %v3856_v56 = vld [vmem:[#allocation9 + $0x18] sm:$0xf0]  ;;  %v4392_v0 = vld [vmem:[#allocation9 + $0x114] sm:$0xf] }
 0x562   : > { %v3859_v61 = vor.u32 %v4360_v54, %v3856_v56  ;;  %v3987_v5 = vor.u32 %v4392_v0, %v3984_v1 }
 0x563   : > { %2562 = vmatpush.bf16.msra.mxu3 %v4091_v57  ;;  %v4376_v57 = vld [vmem:[#allocation9 + $0x94] sm:$0xf] }
 0x564   : > { %2537 = vmatpush.bf16.msra.mxu1 %v3955_v6  ;;  %v3923_v62 = vor.u32 %v4376_v57, %v3920_v60  ;;  %v4048_v6 = vld [vmem:[#allocation9 + $0x198] sm:$0xf0] }
 0x565   : > { %2550 = vmatpush.bf16.msra.mxu2 %v4019_v7  ;;  %2525 = vmatpush.bf16.msra.mxu0 %v3883_v22  ;;  %v4358_v7 = vld [vmem:[#allocation9 + $0x4] sm:$0xf]  ;;  %v4051_v10 = vor.u32 %v4408_v2, %v4048_v6  ;;  %v3979_v22 = vor.u32 %v4390_v13, %v3976_v14 }
 0x566   : > { %v3851_v18 = vor.u32 %v4358_v7, %v3848_v8 }
 0x567   : > { %2563 = vmatpush.bf16.msra.mxu3 %v4083_v12  ;;  %v3912_v12 = vld [vmem:[#allocation9 + $0x88] sm:$0xf0] }
 0x568   : > { %2538 = vmatpush.bf16.msra.mxu1 %v3947_v23  ;;  %v3915_v19 = vor.u32 %v4374_v11, %v3912_v12 }
 0x569   : > { %2551 = vmatpush.bf16.msra.mxu2 %v4011_v26  ;;  %2526 = vmatpush.bf16.msra.mxu0 %v3875_v35 }
 0x56b   : > { %2564 = vmatpush.bf16.msra.mxu3 %v4075_v27  ;;  %v2010_v27 = vld [vmem:[%s5821_s19] sm:$0xf] }
 0x56c   : > { %2539 = vmatpush.bf16.msra.mxu1 %v3939_v50  ;;  %v2051_v30 = vperm.slane %v2010_v27, 0  ;;  %v2053_v32 = vperm.slane %v2010_v27, 2  ;;  %v2054_v51 = vperm.slane %v2010_v27, 3 }
 0x56d   : > { %2552 = vmatpush.bf16.msra.mxu2 %v4003_v39  ;;  %2527 = vmatpush.bf16.msra.mxu0 %v3867_v63 }
 0x56f   : > { %2565 = vmatpush.bf16.msra.mxu3 %v4067_v41 }
 0x570   : > { %2540 = vmatpush.bf16.msra.mxu1 %v3931_v58 }
 0x571   : > { %2553 = vmatpush.bf16.msra.mxu2 %v3995_v48  ;;  %2528 = vmatpush.bf16.msra.mxu0 %v3859_v61 }
 0x573   : > { %2566 = vmatpush.bf16.msra.mxu3 %v4059_v55  ;;  %v2144_v55 = vld [vmem:[#allocation10] sm:$0x3] }
 0x574   : > { %2541 = vmatpush.bf16.msra.mxu1 %v3923_v62  ;;  %v2146_v56 = vperm.slane %v2144_v55, 0  ;;  %v2147_v2 = vperm.slane %v2144_v55, 1  ;;  %v2578_v55 = vld [vmem:[%s5822_s11] sm:$0x3] }
 0x575   : > { %2554 = vmatpush.bf16.msra.mxu2 %v3987_v5  ;;  %2529 = vmatpush.bf16.msra.mxu0 %v3851_v18 }
 0x577   : > { %2567 = vmatpush.bf16.msra.mxu3 %v4051_v10 }
 0x578   : > { %2542 = vmatpush.bf16.msra.mxu1 %v3915_v19 }
 0x579   : > { %2555 = vmatpush.bf16.msra.mxu2 %v3979_v22 }
 0x5c5   : > { %v2016_v17 = vpop.xlane.xlu0 %2015 }
 0x5c6   : > { %v5648_v21 = vmul.f32 0.001953125, %v2016_v17  ;;  %v4040_v17 = vld [vmem:[#allocation9 + $0x188] sm:$0xf0] }
 0x5c7   : > { %v2025_v25 = vpop.xlane.xlu1 %2024  ;;  %v4043_v24 = vor.u32 %v4406_v15, %v4040_v17 }
 0x5c8   : > { %v2027_v28 = vmul.f32 0.001953125, %v2025_v25  ;;  %v2028_v29 = vmul.f32 %v5648_v21, %v5648_v21  ;;  %v2031_v33 = vsub.f32 %v5628_v3, %v5648_v21  ;;  %v2032_v34 = vsub.f32 %v5630_v4, %v5648_v21 }
 0x5c9   : > { %2568 = vmatpush.bf16.msra.mxu3 %v4043_v24  ;;  %v2033_v50 = vsub.f32 %v5636_v9, %v5648_v21  ;;  %v2034_v36 = vsub.f32 %v5642_v16, %v5648_v21 }
 0x5ca   : > { %v2029_v31 = vsub.f32 %v2027_v28, %v2028_v29  ;;  %v2011_v29 = vld [vmem:[#allocation7] sm:$0xf] }
 0x5cb   : > { %v2064_v37 = vperm.slane %v2011_v29, 0  ;;  %v2065_v39 = vperm.slane %v2011_v29, 1  ;;  %v2066_v59 = vperm.slane %v2011_v29, 2  ;;  %v2067_v40 = vperm.slane %v2011_v29, 3 }
 0x5cc   : > { %v2030_v38 = vmax.f32 %v2029_v31, 0.0  ;;  %v2052_v31 = vperm.slane %v2010_v27, 1 }
 0x5ce   : > { %v5652_v45 = vadd.f32 1e-05, %v2030_v38 }
 0x5d0   : > { %4699 = vrsqrt.f32 %v5652_v45  ;;  %vm2042_vm11 = vweird.f32 %v5652_v45 }
 0x5d6   : > { %v4700_v20 = vpop.eup %4699 }
 0x5d7   : > { %v2037_v23 = vmul.f32 %v4700_v20, %v5652_v45  ;;  %vm2043_vm10 = vweird.f32 %v4700_v20 }
 0x5d8   : > { %vm2044_vm12 = vmor %vm2042_vm11, %vm2043_vm10 }
 0x5d9   : > { %v2038_v25 = vmul.f32 %v4700_v20, %v2037_v23 }
 0x5db   : > { %v2039_v26 = vmul.f32 0.5, %v2038_v25 }
 0x5dd   : > { %v2040_v28 = vsub.f32 1.5, %v2039_v26 }
 0x5df   : > { %v2041_v35 = vmul.f32 %v4700_v20, %v2040_v28 }
 0x5e1   : > { %v2045_v38 = vsel %vm2044_vm12, %v4700_v20, %v2041_v35  ;;  %v4437_v35 = vld [vmem:[#allocation13 + $0x78] sm:$0xff] }
 0x5e2   : > { %v2046_v3 = vmul.f32 %v2045_v38, %v2031_v33  ;;  %v2047_v41 = vmul.f32 %v2045_v38, %v2032_v34  ;;  %v2048_v42 = vmul.f32 %v2045_v38, %v2033_v50  ;;  %v2049_v4 = vmul.f32 %v2045_v38, %v2034_v36  ;;  %v4429_v34 = vld [vmem:[#allocation13 + $0x38] sm:$0xff]  ;;  %v4428_v50 = vld [vmem:[#allocation13 + $0x30] sm:$0xff]  ;;  %v4426_v38 = vld [vmem:[#allocation13 + $0x20] sm:$0xff] }
 0x5e3   : > { %v4436_v36 = vld [vmem:[#allocation13 + $0x70] sm:$0xff] }
 0x5e4   : > { %v2059_v43 = vmul.f32 %v2051_v30, %v2046_v3  ;;  %v2060_v44 = vmul.f32 %v2052_v31, %v2047_v41  ;;  %v2061_v45 = vmul.f32 %v2053_v32, %v2048_v42  ;;  %v2062_v63 = vmul.f32 %v2054_v51, %v2049_v4  ;;  %v4687_v32 = vld [vmem:[#allocation21] ss:$0 sm:$0xff]  ;;  %v4435_v51 = vld [vmem:[#allocation13 + $0x68] sm:$0xff]  ;;  %v4432_v3 = vld [vmem:[#allocation13 + $0x50] sm:$0xff] }
 0x5e5   : > { %v5679_v33 = vadd.f32 %v4687_v32, %v5626_v53  ;;  %v4425_v53 = vld [vmem:[#allocation13 + $0x18] sm:$0xff]  ;;  %v4423_v41 = vld [vmem:[#allocation13 + $0x8] sm:$0xff]  ;;  %v4422_v4 = vld [vmem:[#allocation13] sm:$0xff] }
 0x5e6   : > { %v2072_v58 = vadd.f32 %v2064_v37, %v2059_v43  ;;  %v2073_v9 = vadd.f32 %v2065_v39, %v2060_v44  ;;  %v2074_v46 = vadd.f32 %v2066_v59, %v2061_v45  ;;  %v2075_v47 = vadd.f32 %v2067_v40, %v2062_v63  ;;  %v4427_v37 = vld [vmem:[#allocation13 + $0x28] sm:$0xff]  ;;  %v4434_v39 = vld [vmem:[#allocation13 + $0x60] sm:$0xff]  ;;  %v4433_v59 = vld [vmem:[#allocation13 + $0x58] sm:$0xff] }
 0x5e7   : > { %v4424_v40 = vld [vmem:[#allocation13 + $0x10] sm:$0xff]  ;;  %v4431_v42 = vld [vmem:[#allocation13 + $0x48] sm:$0xff]  ;;  %v4430_v43 = vld [vmem:[#allocation13 + $0x40] sm:$0xff] }
 0x5e8   : > { %v2076_v16 = vpack.c.bf16 %v2072_v58, %v2072_v58  ;;  %v2077_v21 = vpack.c.bf16 %v2073_v9, %v2073_v9  ;;  %v2078_v48 = vpack.c.bf16 %v2074_v46, %v2074_v46  ;;  %v2079_v49 = vpack.c.bf16 %v2075_v47, %v2075_v47  ;;  %v4444_v32 = vld [vmem:[#allocation16 + $0x30] sm:$0xff] }
 0x5ea   : > { %2478 = vmatmul.bf16.vlgmr.msrb.gmra.mxu0 %v2076_v16  ;;  %2491 = vmatmul.bf16.vlgmr.msrb.gmra.mxu1 %v2077_v21 }
 0x5eb   : > { %2504 = vmatmul.bf16.vlgmr.msrb.gmra.mxu2 %v2078_v48  ;;  %2517 = vmatmul.bf16.vlgmr.msrb.gmra.mxu3 %v2079_v49 }
 0x5ec   : > { %2756 = vmatpush.bf16.msrb.mxu0 %v4429_v34  ;;  %2769 = vmatpush.bf16.msrb.mxu1 %v4437_v35  ;;  %v4442_v34 = vld [vmem:[#allocation16 + $0x20] sm:$0xff]  ;;  %v4441_v35 = vld [vmem:[#allocation16 + $0x18] sm:$0xff] }
 0x5f0   : > { %2757 = vmatpush.bf16.msrb.mxu0 %v4428_v50  ;;  %2770 = vmatpush.bf16.msrb.mxu1 %v4436_v36  ;;  %v4440_v50 = vld [vmem:[#allocation16 + $0x10] sm:$0xff]  ;;  %v4439_v36 = vld [vmem:[#allocation16 + $0x8] sm:$0xff] }
 0x5f4   : > { %2758 = vmatpush.bf16.msrb.mxu0 %v4427_v37  ;;  %2771 = vmatpush.bf16.msrb.mxu1 %v4435_v51  ;;  %v4438_v37 = vld [vmem:[#allocation16] sm:$0xff] }
 0x5f8   : > { %2759 = vmatpush.bf16.msrb.mxu0 %v4426_v38  ;;  %2772 = vmatpush.bf16.msrb.mxu1 %v4434_v39 }
 0x5fa   : > { %2530 = vmatmul.bf16.vlgmr.msra.gmra.mxu0 %v2076_v16  ;;  %2543 = vmatmul.bf16.vlgmr.msra.gmra.mxu1 %v2077_v21 }
 0x5fb   : > { %2556 = vmatmul.bf16.vlgmr.msra.gmra.mxu2 %v2078_v48  ;;  %2569 = vmatmul.bf16.vlgmr.msra.gmra.mxu3 %v2079_v49 }
 0x5fc   : > { %2760 = vmatpush.bf16.msrb.mxu0 %v4425_v53  ;;  %2773 = vmatpush.bf16.msrb.mxu1 %v4433_v59 }
 0x600   : > { %2761 = vmatpush.bf16.msrb.mxu0 %v4424_v40  ;;  %2774 = vmatpush.bf16.msrb.mxu1 %v4432_v3  ;;  %v4453_v3 = vld [vmem:[#allocation19 + $0x38] sm:$0xff] }
 0x601   : > { %2970 = vmatpush.bf16.msrb.mxu3 %v4453_v3 }
 0x604   : > { %2762 = vmatpush.bf16.msrb.mxu0 %v4423_v41  ;;  %2775 = vmatpush.bf16.msrb.mxu1 %v4431_v42  ;;  %v4452_v42 = vld [vmem:[#allocation19 + $0x30] sm:$0xff] }
 0x605   : > { %2971 = vmatpush.bf16.msrb.mxu3 %v4452_v42 }
 0x608   : > { %2763 = vmatpush.bf16.msrb.mxu0 %v4422_v4  ;;  %2776 = vmatpush.bf16.msrb.mxu1 %v4430_v43 }
 0x667   : > { %v2479_v52 = vpop.f32.mrf.mxu0  ;;  %v2492_v54 = vpop.f32.mrf.mxu1 }
 0x668   : > { %v2480_v0 = vadd.f32 %v2479_v52, %v2146_v56 }
 0x66a   : > { %v2493_v1 = vadd.f32 %v2492_v54, %v2480_v0  ;;  %v2610_v0 = vperm.slane %v2578_v55, 1 }
 0x66e   : > { %v2505_v57 = vpop.f32.mrf.mxu2  ;;  %v2518_v60 = vpop.f32.mrf.mxu3 }
 0x66f   : > { %v2481_v61 = vpop.f32.mrf.mxu0  ;;  %v2494_v62 = vpop.f32.mrf.mxu1  ;;  %v2506_v7 = vadd.f32 %v2505_v57, %v2493_v1  ;;  %v2579_v57 = vld [vmem:[#allocation12] sm:$0x3] }
 0x670   : > { %v2609_v62 = vperm.slane %v2578_v55, 0  ;;  %v4448_v55 = vld [vmem:[#allocation19 + $0x10] sm:$0xff] }
 0x671   : > { %v2519_v12 = vadd.f32 %v2518_v60, %v2506_v7  ;;  %v2617_v7 = vperm.slane %v2579_v57, 1 }
 0x673   : > { %v2574_v17 = vmul.f32 0.01, %v2519_v12 }
 0x675   : > { %v5668_v23 = vmax.f32 %v2519_v12, %v2574_v17 }
 0x676   : > { %v2507_v5 = vpop.f32.mrf.mxu2  ;;  %v2520_v6 = vpop.f32.mrf.mxu3 }
 0x677   : > { %v2531_v8 = vpop.f32.mrf.mxu0  ;;  %v2544_v10 = vpop.f32.mrf.mxu1  ;;  %v2583_v29 = vmul.f32 %v5668_v23, %v5668_v23  ;;  %v2616_v5 = vperm.slane %v2579_v57, 0 }
 0x678   : > { %v2532_v11 = vadd.f32 %v2531_v8, %v2147_v2 }
 0x67a   : > { %v2545_v13 = vadd.f32 %v2544_v10, %v2532_v11 }
 0x67e   : > { %v2557_v14 = vpop.f32.mrf.mxu2  ;;  %v2570_v15 = vpop.f32.mrf.mxu3 }
 0x67f   : > { %v2558_v18 = vadd.f32 %v2557_v14, %v2545_v13  ;;  %v2533_v19 = vpop.f32.mrf.mxu0  ;;  %v2546_v20 = vpop.f32.mrf.mxu1 }
 0x681   : > { %v2571_v22 = vadd.f32 %v2570_v15, %v2558_v18  ;;  %v4688_v15 = vld [vmem:[%s5823_s20] ss:$0 sm:$0xff] }
 0x683   : > { %v2575_v24 = vmul.f32 0.01, %v2571_v22 }
 0x685   : > { %v5670_v25 = vmax.f32 %v2571_v22, %v2575_v24 }
 0x686   : > { %v2559_v26 = vpop.f32.mrf.mxu2  ;;  %v2572_v27 = vpop.f32.mrf.mxu3 }
 0x687   : > { %v2580_v28 = vadd.f32 %v5670_v25, %v5668_v23  ;;  %v2584_v30 = vmul.f32 %v5670_v25, %v5670_v25 }
 0x689   : > { %2581 = vadd.xlane.f32.xlu2 %v2580_v28  ;;  %v2585_v31 = vadd.f32 %v2584_v30, %v2583_v29 }
 0x68b   : > { %2586 = vadd.xlane.f32.xlu0 %v2585_v31  ;;  %v4445_v31 = vld [vmem:[#allocation16 + $0x38] sm:$0xff] }
 0x68c   : > { %2886 = vmatpush.bf16.msrb.mxu2 %v4445_v31 }
 0x690   : > { %2887 = vmatpush.bf16.msrb.mxu2 %v4444_v32 }
 0x693   : > { %1864 = vmax.xlane.f32.xlu0 %v5679_v33 }
 0x6fc   : > { %v2582_v44 = vpop.xlane.xlu2 %2581 }
 0x6fd   : > { %v2588_v45 = vmul.f32 0.00390625, %v2582_v44  ;;  %v4451_v44 = vld [vmem:[#allocation19 + $0x28] sm:$0xff] }
 0x6fe   : > { %v2587_v63 = vpop.xlane.xlu0 %2586  ;;  %2972 = vmatpush.bf16.msrb.mxu3 %v4451_v44 }
 0x6ff   : > { %v2589_v58 = vmul.f32 0.00390625, %v2587_v63  ;;  %v2590_v9 = vmul.f32 %v2588_v45, %v2588_v45  ;;  %v2593_v60 = vsub.f32 %v5668_v23, %v2588_v45  ;;  %v2594_v61 = vsub.f32 %v5670_v25, %v2588_v45  ;;  %v4450_v45 = vld [vmem:[#allocation19 + $0x20] sm:$0xff] }
 0x701   : > { %v2591_v46 = vsub.f32 %v2589_v58, %v2590_v9 }
 0x702   : > { %2973 = vmatpush.bf16.msrb.mxu3 %v4450_v45 }
 0x703   : > { %v2592_v47 = vmax.f32 %v2591_v46, 0.0 }
 0x705   : > { %v2595_v16 = vadd.f32 1e-05, %v2592_v47  ;;  %v4449_v47 = vld [vmem:[#allocation19 + $0x18] sm:$0xff] }
 0x706   : > { %v1865_v19 = vpop.xlane.xlu0 %1864  ;;  %2974 = vmatpush.bf16.msrb.mxu3 %v4449_v47 }
 0x707   : > { %4701 = vrsqrt.f32 %v2595_v16  ;;  %vm2602_vm14 = vweird.f32 %v2595_v16  ;;  %v1866_v23 = vsub.f32 %v5679_v33, %v1865_v19  ;;  %v4443_v33 = vld [vmem:[#allocation16 + $0x28] sm:$0xff] }
 0x708   : > { %2888 = vmatpush.bf16.msrb.mxu2 %v4443_v33 }
 0x709   : > { %v1867_v26 = vmul.f32 1.442695, %v1866_v23 }
 0x70a   : > { %2975 = vmatpush.bf16.msrb.mxu3 %v4448_v55 }
 0x70b   : > { %4703 = vpow2.f32 %v1867_v26 }
 0x70c   : > { %2889 = vmatpush.bf16.msrb.mxu2 %v4442_v34 }
 0x70d   : > { %v4702_v21 = vpop.eup %4701 }
 0x70e   : > { %v2597_v48 = vmul.f32 %v4702_v21, %v2595_v16  ;;  %vm2603_vm13 = vweird.f32 %v4702_v21 }
 0x70f   : > { %vm2604_vm15 = vmor %vm2602_vm14, %vm2603_vm13 }
 0x710   : > { %v2598_v49 = vmul.f32 %v4702_v21, %v2597_v48  ;;  %2890 = vmatpush.bf16.msrb.mxu2 %v4441_v35 }
 0x711   : > { %v5696_v30 = vpop.eup %4703 }
 0x712   : > { %v2599_v52 = vmul.f32 0.5, %v2598_v49 }
 0x714   : > { %v2600_v54 = vsub.f32 1.5, %v2599_v52  ;;  %2891 = vmatpush.bf16.msrb.mxu2 %v4440_v50 }
 0x716   : > { %v2601_v56 = vmul.f32 %v4702_v21, %v2600_v54 }
 0x718   : > { %v2605_v1 = vsel %vm2604_vm15, %v4702_v21, %v2601_v56  ;;  %2892 = vmatpush.bf16.msrb.mxu2 %v4439_v36 }
 0x719   : > { %v2606_v2 = vmul.f32 %v2605_v1, %v2593_v60  ;;  %v2607_v6 = vmul.f32 %v2605_v1, %v2594_v61  ;;  %v4689_v1 = vld [vmem:[%s5824_s17] ss:$0 sm:$0xff] }
 0x71b   : > { %v2613_v8 = vmul.f32 %v2609_v62, %v2606_v2  ;;  %v2614_v10 = vmul.f32 %v2610_v0, %v2607_v6 }
 0x71c   : > { %2893 = vmatpush.bf16.msrb.mxu2 %v4438_v37 }
 0x71d   : > { %v2620_v11 = vadd.f32 %v2616_v5, %v2613_v8  ;;  %v2621_v12 = vadd.f32 %v2617_v7, %v2614_v10  ;;  %v4690_v8 = vld [vmem:[#allocation15] ss:$0 sm:$0xff] }
 0x71f   : > { %v2622_v13 = vpack.c.bf16 %v2620_v11, %v2620_v11  ;;  %v2623_v14 = vpack.c.bf16 %v2621_v12, %v2621_v12 }
 0x721   : > { %2764 = vmatmul.bf16.vlgmr.msrb.gmra.mxu0 %v2622_v13  ;;  %2777 = vmatmul.bf16.vlgmr.msrb.gmra.mxu1 %v2623_v14  ;;  %v4447_v13 = vld [vmem:[#allocation19 + $0x8] sm:$0xff]  ;;  %v4446_v14 = vld [vmem:[#allocation19] sm:$0xff] }
 0x722   : > { %2976 = vmatpush.bf16.msrb.mxu3 %v4447_v13 }
 0x726   : > { %2977 = vmatpush.bf16.msrb.mxu3 %v4446_v14 }
 0x79e   : > { %v2765_v17 = vpop.f32.mrf.mxu0  ;;  %v2778_v18 = vpop.f32.mrf.mxu1 }
 0x79f   : > { %v2766_v20 = vadd.f32 %v4688_v15, %v2765_v17  ;;  %v4691_v15 = vld [vmem:[#allocation18] ss:$0 sm:$0xff] }
 0x7a1   : > { %v2779_v22 = vadd.f32 %v2778_v18, %v2766_v20 }
 0x7a3   : > { %v2782_v24 = vmul.f32 0.01, %v2779_v22 }
 0x7a5   : > { %v5691_v25 = vmax.f32 %v2779_v22, %v2782_v24  ;;  %v4692_v24 = vld [vmem:[#allocation21] ss:$0 sm:$0xff] }
 0x7a6   : > { %v2767_v27 = vpop.f32.mrf.mxu0  ;;  %v2780_v28 = vpop.f32.mrf.mxu1 }
 0x7a7   : > { %2786 = vadd.xlane.f32.xlu1 %v5691_v25  ;;  %v2788_v29 = vmul.f32 %v5691_v25, %v5691_v25 }
 0x7a9   : > { %2789 = vadd.xlane.f32.xlu2 %v2788_v29 }
 0x7b1   : > { %1869 = vadd.xlane.f32.xlu2 %v5696_v30 }
 0x81a   : > { %v2787_v51 = vpop.xlane.xlu1 %2786 }
 0x81b   : > { %v2791_v38 = vmul.f32 0.0078125, %v2787_v51 }
 0x81c   : > { %v2790_v39 = vpop.xlane.xlu2 %2789 }
 0x81d   : > { %v2793_v53 = vmul.f32 %v2791_v38, %v2791_v38  ;;  %v2792_v59 = vmul.f32 0.0078125, %v2790_v39  ;;  %v2796_v62 = vsub.f32 %v5691_v25, %v2791_v38 }
 0x81f   : > { %v2794_v40 = vsub.f32 %v2792_v59, %v2793_v53 }
 0x821   : > { %v2795_v41 = vmax.f32 %v2794_v40, 0.0 }
 0x823   : > { %v2797_v4 = vadd.f32 1e-05, %v2795_v41 }
 0x824   : > { %v1870_v43 = vpop.xlane.xlu2 %1869 }
 0x825   : > { %4705 = vrsqrt.f32 %v2797_v4  ;;  %v1882_v49 = vand.u32 2147483648, %v1870_v43  ;;  %v1880_v54 = vand.u32 2147483647, %v1870_v43  ;;  %vm1876_vm2 = vweird.f32 %v1870_v43 }
 0x826   : > { %4707 = vrcp.f32 %v1870_v43  ;;  %vm2804_vm3 = vweird.f32 %v2797_v4 }
 0x827   : > { %v1883_v61 = vor.u32 1.1754944e-38, %v1882_v49  ;;  %vm1881_vm6 = vcmp.eq.f32.partialorder %v1880_v54, 8.507059e+37 }
 0x82b   : > { %v4706_v63 = vpop.eup %4705 }
 0x82c   : > { %v4708_v58 = vpop.eup %4707  ;;  %v2799_v9 = vmul.f32 %v4706_v63, %v2797_v4  ;;  %vm2805_vm1 = vweird.f32 %v4706_v63 }
 0x82d   : > { %v1872_v46 = vmul.f32 %v4708_v58, %v1870_v43  ;;  %vm1877_vm0 = vweird.f32 %v4708_v58  ;;  %vm2806_vm5 = vmor %vm2804_vm3, %vm2805_vm1 }
 0x82e   : > { %v2800_v16 = vmul.f32 %v4706_v63, %v2799_v9  ;;  %vm1878_vm4 = vmor %vm1876_vm2, %vm1877_vm0 }
 0x82f   : > { %v1873_v21 = vsub.f32 1.0, %v1872_v46 }
 0x830   : > { %v2801_v48 = vmul.f32 0.5, %v2800_v16 }
 0x831   : > { %v1874_v52 = vmul.f32 %v4708_v58, %v1873_v21 }
 0x832   : > { %v2802_v56 = vsub.f32 1.5, %v2801_v48 }
 0x833   : > { %v1875_v57 = vadd.f32 %v4708_v58, %v1874_v52 }
 0x834   : > { %v2803_v60 = vmul.f32 %v4706_v63, %v2802_v56 }
 0x835   : > { %v1879_v0 = vsel %vm1878_vm4, %v4708_v58, %v1875_v57 }
 0x836   : > { %v2807_v2 = vsel %vm2806_vm5, %v4706_v63, %v2803_v60  ;;  %v1884_v5 = vsel %vm1881_vm6, %v1883_v61, %v1879_v0 }
 0x837   : > { %v1885_v6 = vmul.f32 %v5696_v30, %v1884_v5  ;;  %v2808_v7 = vmul.f32 %v2807_v2, %v2796_v62 }
 0x839   : > { %1886 = vst [vmem:[%s5705_s4] sm:$0xff] %v1885_v6  ;;  %v2812_v10 = vmul.f32 %v4689_v1, %v2808_v7 }
 0x83b   : > { %v2816_v11 = vadd.f32 %v4690_v8, %v2812_v10 }
 0x83d   : > { %v2817_v12 = vpack.c.bf16 %v2816_v11, %v2816_v11 }
 0x83f   : > { %2894 = vmatmul.bf16.vlgmr.msrb.gmra.mxu2 %v2817_v12 }
 0x8c2   : > { %v2895_v17 = vpop.f32.mrf.mxu2 }
 0x8c3   : > { %v2896_v18 = vadd.f32 %v4691_v15, %v2895_v17 }
 0x8c5   : > { %v2899_v19 = vmul.f32 0.01, %v2896_v18 }
 0x8c7   : > { %v2900_v20 = vmax.f32 %v2896_v18, %v2899_v19 }
 0x8c9   : > { %v2901_v22 = vpack.c.bf16 %v2900_v20, %v2900_v20 }
 0x8ca   : > { %v2897_v23 = vpop.f32.mrf.mxu2 }
 0x8cb   : > { %2978 = vmatmul.bf16.vlgmr.msrb.gmra.mxu3 %v2901_v22 }
 0x94e   : > { %v2979_v25 = vpop.f32.mrf.mxu3 }
 0x94f   : > { %v2980_v26 = vadd.f32 %v4692_v24, %v2979_v25 }
 0x951   : > { %2983 = vmax.xlane.f32.xlu1 %v2980_v26 }
 0x956   : > { %v2981_v27 = vpop.f32.mrf.mxu3 }
 0x9c4   : > { %v2984_v28 = vpop.xlane.xlu1 %2983 }
 0x9c5   : > { %v2985_v29 = vsub.f32 %v2980_v26, %v2984_v28 }
 0x9c7   : > { %v2986_v30 = vmul.f32 1.442695, %v2985_v29 }
 0x9c9   : > { %4709 = vpow2.f32 %v2986_v30 }
 0x9cf   : > { %v4710_v31 = vpop.eup %4709 }
 0x9d0   : > { %2988 = vadd.xlane.f32.xlu0 %v4710_v31 }
 0xa43   : > { %v2989_v32 = vpop.xlane.xlu0 %2988 }
 0xa44   : > { %4711 = vrcp.f32 %v2989_v32  ;;  %v3001_v50 = vand.u32 2147483648, %v2989_v32  ;;  %v2999_v37 = vand.u32 2147483647, %v2989_v32  ;;  %vm2995_vm8 = vweird.f32 %v2989_v32 }
 0xa46   : > { %v3002_v38 = vor.u32 1.1754944e-38, %v3001_v50  ;;  %vm3000_vm10 = vcmp.eq.f32.partialorder %v2999_v37, 8.507059e+37 }
 0xa4a   : > { %v4712_v33 = vpop.eup %4711 }
 0xa4b   : > { %v2991_v34 = vmul.f32 %v4712_v33, %v2989_v32  ;;  %vm2996_vm7 = vweird.f32 %v4712_v33 }
 0xa4c   : > { %vm2997_vm9 = vmor %vm2995_vm8, %vm2996_vm7 }
 0xa4d   : > { %v2992_v35 = vsub.f32 1.0, %v2991_v34 }
 0xa4f   : > { %v2993_v36 = vmul.f32 %v4712_v33, %v2992_v35 }
 0xa51   : > { %v2994_v51 = vadd.f32 %v4712_v33, %v2993_v36 }
 0xa53   : > { %v2998_v39 = vsel %vm2997_vm9, %v4712_v33, %v2994_v51  ;;  %3012 = sbr.rel (!%p5395_p10) target bundleno = 2687 (0xa7f), region = 144 }
 0xa54   : > { %v3003_v53 = vsel %vm3000_vm10, %v3002_v38, %v2998_v39 }
 0xa55   : > { %v3004_v59 = vmul.f32 %v4710_v31, %v3003_v53 }
 0xa57   : > { %3005 = vst [vmem:[%s5705_s4 + $0x8] sm:$0xff] %v3004_v59 }
 0xa58   : > { %s5836_s22 = smov (!%p3015_p4, %s3014_s22), 2 }
 0xa59   : > { %s4230_s30 = sshll.u32 %s5836_s22, 3 }
 0xa5a   : > { %p4233_p5 = scmp.eq.s32.totalorder %s4230_s30, 0 }
 0xa5b   : > { %s5722_s21 = sshrl.u32 (!%p4233_p5), %s5836_s22, 1 }
 0xa5c   : > { %3023 = sbr.rel (%p4233_p5) target bundleno = 2687 (0xa7f), region = 148  ;;  %p4234_p10 = scmp.le.s32.totalorder (!%p4233_p5), %s5722_s21, 0 }
 0xa61   : > { %3196 = sbr.rel (%p4234_p10) target bundleno = 2670 (0xa6e), region = 230  ;;  %s5204_s23 = smov (!%p4234_p10), %s5716_s1  }
 0xa62   : > { %s5208_s3 = smov (!%p4234_p10), %s5705_s4   ;;  %s5212_s29 = smov (!%p4234_p10), 0  }
 0xa63   : > { %s5216_s18 = smov (!%p4234_p10), 0  }
 0xa66 LB: >> { %v3088_v40 = vld [vmem:[%s5210_s3] sm:$0xff]  ;;  %v3090_v3 = vld [vmem:[%s5210_s3 + $0x8] sm:$0xff]  ;;  %s3092_s7 = sadd.s32 1, %s5214_s29  ;;  %s3082_s18 = sadd.s32 1, %s5218_s18   ;;  %s5218_s18 = sphi %s5216_s18, %s3082_s18   ;;  %s5214_s29 = sphi %s5212_s29, %s5213_s29   ;;  %s5210_s3 = sphi %s5208_s3, %s3097_s3   ;;  %s5206_s23 = sphi %s5204_s23, %s3098_s23  }
 0xa67   : >> { %3089 = vst [vmem:[%s5206_s23] sm:$0xff] %v3088_v40  ;;  %p3093_p2 = scmp.ge.s32.totalorder %s3092_s7, %s5722_s21  ;;  %p3081_p11 = scmp.ge.s32.totalorder %s3082_s18, %s5722_s21 }
 0xa68   : >> { %3091 = vst [vmem:[%s5206_s23 + $0x8] sm:$0xff] %v3090_v3 }
 0xa69   : >> { %s5838_s7 = smov (%p3093_p2, %s3092_s7), 0  ;;  %3084 = sbr.rel (!%p3081_p11) target bundleno = 2662 (0xa66), region = 236 }
 0xa6a   : >> { %s4235_s27 = sshll.u32 %s5838_s7, 4  ;;  %s5213_s29 = smov %s5838_s7  }
 0xa6b   : >> { %s3097_s3 = scalar_lea.vmem %s5705_s4, %s4235_s27 [#allocation22]   ;;  %s3098_s23 = scalar_lea.vmem %s5716_s1, %s4235_s27  }
 0xa6e PF: > { %s5732_s0 = sand.u32 1, %s5836_s22   ;;  %s4455_s24 = sshll.u32 %s5722_s21, 4 }
 0xa6f   : > { %s3103_s28 = scalar_lea.vmem %s5705_s4, %s4455_s24 [#allocation22]   ;;  %s3105_s30 = scalar_lea.vmem %s5716_s1, %s4455_s24  }
 0xa70   : > { %p4240_p6 = scmp.le.s32.totalorder %s5732_s0, 0 }
 0xa71   : > { %s5220_s29 = smov (!%p4240_p6), %s3105_s30   ;;  %s5224_s27 = smov (!%p4240_p6), %s3103_s28  }
 0xa72   : > { %3210 = sbr.rel (%p4240_p6) target bundleno = 2687 (0xa7f), region = 241  ;;  %s5228_s23 = smov (!%p4240_p6), 0  }
 0xa73   : > { %s5232_s3 = smov (!%p4240_p6), 0  }
 0xa77 LB: >> { %v3115_v41 = vld [vmem:[%s5226_s27] sm:$0xff]  ;;  %s3117_s22 = sadd.s32 1, %s5230_s23  ;;  %s3109_s3 = sadd.s32 1, %s5234_s3   ;;  %s5234_s3 = sphi %s5232_s3, %s3109_s3   ;;  %s5230_s23 = sphi %s5228_s23, %s5229_s23   ;;  %s5226_s27 = sphi %s5224_s27, %s3122_s27   ;;  %s5222_s29 = sphi %s5220_s29, %s3123_s29  }
 0xa78   : >> { %3116 = vst [vmem:[%s5222_s29] sm:$0xff] %v3115_v41  ;;  %p3118_p7 = scmp.ge.s32.totalorder %s3117_s22, %s5732_s0  ;;  %p3108_p9 = scmp.ge.s32.totalorder %s3109_s3, %s5732_s0 }
 0xa7a   : >> { %s5840_s22 = smov (%p3118_p7, %s3117_s22), 0  ;;  %3111 = sbr.rel (!%p3108_p9) target bundleno = 2679 (0xa77), region = 247 }
 0xa7b   : >> { %s4241_s4 = sshll.u32 %s5840_s22, 3  ;;  %s5229_s23 = smov %s5840_s22  }
 0xa7c   : >> { %s3122_s27 = scalar_lea.vmem %s3103_s28, %s4241_s4 [#allocation22]   ;;  %s3123_s29 = scalar_lea.vmem %s3105_s30, %s4241_s4  }
 0xa7f PF: > { %s5828_s27 = sld [smem:[#allocation31_spill]]  ;;  %s5830_s24 = smov %s5194_s25 }
 0xa80   : > { %s5829_s1 = sld [smem:[#allocation32_spill]]  ;;  %s5831_s25 = smov %s5198_s26 }
 0xa85   : > { %p33_p8 = scmp.ge.s32.totalorder %s5828_s27, 4  }
 0xa86   : > { %s5832_s26 = smov %s5829_s1 }
 0xa87   :  { %35 = sbr.rel (!%p33_p8) target bundleno = 18 (0x12), region = 258 }
 0xa8c   :  { %3139 = vsyncpa [#allocation3], 1 }
 0xa8d   :  { %3141 = vsyncpa [#allocation3 + $0x1], 1 }
 0xa8e   :  { %3142 = vsyncpa [#allocation5], 1 }
 0xa8f   :  { %3143 = vsyncpa [#allocation8], 1 }
 0xa90   :  { %3144 = vsyncpa [#allocation11], 1 }
 0xa91   :  { %3145 = vsyncpa [#allocation14], 1 }
 0xa92   :  { %3146 = vsyncpa [#allocation17], 1 }
 0xa93   :  { %3147 = vsyncpa [#allocation20], 1 }

</bundles_post_ra>
